<compile_context>
chip_gen: v6e
topology: v6e:2x2x1
jax: 0.10.0
libtpu: 0.0.40
codegen_flags: <defaults>
</compile_context>

<pallas_src>
import jax
import jax.numpy as jnp
from jax.experimental import pallas as pl
from jax.experimental.pallas import tpu as pltpu

# ----- module hyperparameters (consistent with the reference module) -----
INPUT_DIM = 13
SELF_STATE_DIM = 6
MLP1_DIMS = (64, 32)          # global_state_dim = 32
MLP2_DIMS = (32, 32)
ATTENTION_DIMS = (32, 32, 1)  # with_global_state=True -> attention input is 2*32
MLP3_DIMS = (64, 32, 1)       # mlp3 input = MLP2_DIMS[-1] + SELF_STATE_DIM = 38
WITH_GLOBAL_STATE = True
# cell_size / cell_num are unused in forward()

D1 = MLP1_DIMS[-1]            # 32
D2 = MLP2_DIMS[-1]            # 32
DF = 2 * D2                   # 64 = fused slab width
A1, A2 = ATTENTION_DIMS[0], ATTENTION_DIMS[1]

# ----- packed-parameter row offsets -----
# 64-wide bf16 weight pack (all offsets multiples of 16 = bf16 sublane tile):
#   w11 (13x64), wf1=[w21|wa1h] (32x64), wf2=blockdiag(w22,wa2) (64x64),
#   wa1g64=[0|wa1_g] (32x64), w31_self (6x64), w31_feat padded with zero rows (64x64)
W11_OFF, WF1_OFF, WF2_OFF, WA1G_OFF, W31S_OFF, W31F_OFF, WP64_ROWS = 0, 16, 48, 112, 144, 160, 224
# 32-wide bf16 weight pack: w12 (64x32), w32 (64x32)
W12_OFF, W32_OFF, WP32_ROWS = 0, 64, 128
# 64-wide f32 bias / row-vector pack rows
B11_ROW, BF1_ROW, BF2_ROW, B31_ROW, WA3_ROW, BP64_ROWS = 0, 1, 2, 3, 4, 8
# 32-wide f32 bias / row-vector pack rows
B12_ROW, B32_ROW, W33_ROW, BA3_ROW, B33_ROW, BP32_ROWS = 0, 1, 2, 3, 4, 8


def _value_kernel(state_ref, wp64_ref, wp32_ref, bp64_ref, bp32_ref, out_ref):
    f32, bf16 = jnp.float32, jnp.bfloat16
    TB, N, Din = state_ref.shape
    M = TB * N

    x3 = state_ref[...]                       # (TB, N, Din) f32
    x = x3.reshape(M, Din)                    # single layout-preserving flatten

    # --- bf16 weights (static, 16-aligned row slices; each read exactly once) ---
    w11 = wp64_ref[W11_OFF:W11_OFF + INPUT_DIM, :]
    wf1 = wp64_ref[WF1_OFF:WF1_OFF + D1, :]                  # [w21 | wa1h]      (32, 64)
    wf2 = wp64_ref[WF2_OFF:WF2_OFF + DF, :]                  # [[w22,0],[0,wa2]] (64, 64)
    wa1g = wp64_ref[WA1G_OFF:WA1G_OFF + D1, :]               # [0 | wa1_g]       (32, 64)
    w31s = wp64_ref[W31S_OFF:W31S_OFF + SELF_STATE_DIM, :]   # (6, 64)
    w31f = wp64_ref[W31F_OFF:W31F_OFF + DF, :]               # [w31_feat ; 0]    (64, 64)
    w12 = wp32_ref[W12_OFF:W12_OFF + MLP1_DIMS[0], :]        # (64, 32)
    w32 = wp32_ref[W32_OFF:W32_OFF + MLP3_DIMS[0], :]        # (64, 32)

    # --- f32 biases / row vectors ---
    b11 = bp64_ref[B11_ROW:B11_ROW + 1, :]
    bf1 = bp64_ref[BF1_ROW:BF1_ROW + 1, :]                   # [b21 | ba1]
    bf2 = bp64_ref[BF2_ROW:BF2_ROW + 1, :]                   # [b22 | ba2]
    b31 = bp64_ref[B31_ROW:B31_ROW + 1, :]
    wa3r = bp64_ref[WA3_ROW:WA3_ROW + 1, :]                  # [0 | wa3^T]  (1, 64)
    b12 = bp32_ref[B12_ROW:B12_ROW + 1, :]
    b32 = bp32_ref[B32_ROW:B32_ROW + 1, :]
    w33r = bp32_ref[W33_ROW:W33_ROW + 1, :]                  # (1, 32)
    ba3 = bp32_ref[BA3_ROW:BA3_ROW + 1, 0:1]                 # (1, 1)
    b33 = bp32_ref[B33_ROW:B33_ROW + 1, 0:1]                 # (1, 1)

    def mm(a, w):  # bf16 MXU operands, f32 accumulation
        return jnp.dot(a.astype(bf16), w, preferred_element_type=f32)

    # --- mlp1 (last_relu=True: ReLU after every layer) ---
    h = jnp.maximum(mm(x, w11) + b11, 0.0)                   # (M, 64)
    h1 = jnp.maximum(mm(h, w12) + b12, 0.0)                  # (M, 32) f32

    # --- global state at batch granularity (sublane reduce, then (TB,32)x(32,64)) ---
    h1_3 = h1.reshape(TB, N, D1)
    g2 = jnp.mean(h1_3, axis=1)                              # (TB, 32)
    g_add = mm(g2, wa1g)                                     # (TB, 64); lanes 0:32 exactly 0

    # --- fused layer 1: h1 @ [w21 | wa1h]; both halves are ReLU'd ---
    pre1 = (mm(h1, wf1) + bf1).reshape(TB, N, DF) + g_add[:, None, :]
    s1 = jnp.maximum(pre1, 0.0).reshape(M, DF)               # [h2 | a1]  (M, 64)

    # --- fused layer 2: block-diagonal [[w22,0],[0,wa2]] -> [m2 | a2_pre] ---
    slab2 = (mm(s1, wf2) + bf2).reshape(TB, N, DF)           # (TB, N, 64)

    # attention score (32 -> 1): ReLU'd attention half . wa3 via VPU mult + lane
    # reduce; wa3r is zero on the mlp2 lanes so their ReLU'd values drop out.
    scores = jnp.sum(jnp.maximum(slab2, 0.0) * wa3r, axis=-1, keepdims=True) + ba3  # (TB,N,1)

    # masked exp + per-batch normalization over humans (matches exp(s) * (s != 0));
    # kept entirely in f32 to preserve the exact-zero padded-human semantics.
    scores_exp = jnp.exp(scores) * (scores != 0.0).astype(f32)
    denom = jnp.sum(scores_exp, axis=1, keepdims=True)       # (TB, 1, 1)
    weights = scores_exp / denom                             # (TB, N, 1)
    # TODO(synk): PyTorch stores weights[0,:,0] into self.attention_weights (host-side
    # numpy side effect); not reproduced here.

    # weighted feature over humans; the (un-ReLU'd) attention lanes are multiplied
    # by the zero rows of w31f below, so they contribute nothing.
    weighted = jnp.sum(weights * slab2, axis=1)              # (TB, 64)

    # --- mlp3 on concat([self_state, weighted_feature]) via split first-layer weights ---
    self_state = x3[:, 0, :SELF_STATE_DIM]                   # (TB, 6)
    j = jnp.maximum(mm(self_state, w31s) + mm(weighted, w31f) + b31, 0.0)
    j = jnp.maximum(mm(j, w32) + b32, 0.0)                   # (TB, 32)

    # final value layer (32 -> 1): VPU reduce; write a lane-dense (1, TB) row
    value = jnp.sum(j * w33r, axis=-1)                       # (TB,)
    out_ref[...] = value[None, :] + b33                      # (1, TB)


def _round_up(x, m):
    return -(-x // m) * m


def _choose_tb(B, cap=256):
    """Adaptive batch tile.

    Small batches pad only to the f32 sublane (8).  Large batches split into
    roughly equal 8-aligned blocks no bigger than `cap` (cap=256 keeps per-block
    VMEM modest and yields >= 2 "parallel" grid steps for v7x's two TensorCores
    whenever B > cap; pass tb=512 explicitly on v5e/v6e for maximum amortization).
    """
    if B <= cap:
        return _round_up(max(B, 1), 8)
    nblk = -(-B // cap)
    return _round_up(-(-B // nblk), 8)


def value_network(state, packed, *, tb=None):
    """state: (B, N, INPUT_DIM) -> (B, 1) values."""
    wp64, wp32, bp64, bp32 = packed
    B, N, Din = state.shape
    state = state.astype(jnp.float32)

    if tb is None:
        tb = _choose_tb(B)
    num_blocks = -(-B // tb)
    Bp = num_blocks * tb
    if Bp != B:
        # Padded rows are computed and discarded — everything is row-local.
        state = jnp.pad(state, ((0, Bp - B), (0, 0), (0, 0)))

    # advisory cost hint for XLA scheduling around the custom call
    per_row = INPUT_DIM * 64 + 64 * 32 + 32 * DF + DF * DF
    per_batch = D1 * DF + SELF_STATE_DIM * 64 + DF * DF + 64 * 32
    param_bytes = sum(int(a.size * a.dtype.itemsize) for a in (wp64, wp32, bp64, bp32))
    cost = pl.CostEstimate(
        flops=2 * (Bp * N * per_row + Bp * per_batch),
        transcendentals=Bp * N,
        bytes_accessed=int(state.size * 4 + Bp * 4 + param_bytes),
    )

    out = pl.pallas_call(
        _value_kernel,
        out_shape=jax.ShapeDtypeStruct((num_blocks, tb), jnp.float32),
        grid_spec=pltpu.PrefetchScalarGridSpec(
            num_scalar_prefetch=0,
            grid=(num_blocks,),
            in_specs=[
                pl.BlockSpec((tb, N, Din), lambda b: (b, 0, 0)),
                pl.BlockSpec(wp64.shape, lambda b: (0, 0)),   # resident (same block)
                pl.BlockSpec(wp32.shape, lambda b: (0, 0)),
                pl.BlockSpec(bp64.shape, lambda b: (0, 0)),
                pl.BlockSpec(bp32.shape, lambda b: (0, 0)),
            ],
            out_specs=pl.BlockSpec((1, tb), lambda b: (b, 0)),
        ),
        compiler_params=pltpu.CompilerParams(
            dimension_semantics=("parallel",),
            vmem_limit_bytes=48 * 1024 * 1024,
        ),
        cost_estimate=cost,
    )(state, wp64, wp32, bp64, bp32)
    return out.reshape(Bp, 1)[:B]


# ------------------- parameter init (deterministic, PyTorch-style) -------------------
def _linear(key, fan_in, fan_out):
    k1, k2 = jax.random.split(key)
    lim = 1.0 / (fan_in ** 0.5)
    w = jax.random.uniform(k1, (fan_in, fan_out), jnp.float32, -lim, lim)
    b = jax.random.uniform(k2, (1, fan_out), jnp.float32, -lim, lim)
    return w, b


def init_params(key):
    keys = jax.random.split(key, 10)
    att_in = 2 * D1 if WITH_GLOBAL_STATE else D1
    mlp3_in = D2 + SELF_STATE_DIM
    w11, b11 = _linear(keys[0], INPUT_DIM, MLP1_DIMS[0])
    w12, b12 = _linear(keys[1], MLP1_DIMS[0], MLP1_DIMS[1])
    w21, b21 = _linear(keys[2], D1, MLP2_DIMS[0])
    w22, b22 = _linear(keys[3], MLP2_DIMS[0], MLP2_DIMS[1])
    wa1, ba1 = _linear(keys[4], att_in, ATTENTION_DIMS[0])
    wa2, ba2 = _linear(keys[5], ATTENTION_DIMS[0], ATTENTION_DIMS[1])
    wa3, ba3 = _linear(keys[6], ATTENTION_DIMS[1], ATTENTION_DIMS[2])
    w31, b31 = _linear(keys[7], mlp3_in, MLP3_DIMS[0])
    w32, b32 = _linear(keys[8], MLP3_DIMS[0], MLP3_DIMS[1])
    w33, b33 = _linear(keys[9], MLP3_DIMS[1], MLP3_DIMS[2])
    return dict(w11=w11, b11=b11, w12=w12, b12=b12, w21=w21, b21=b21, w22=w22, b22=b22,
                wa1=wa1, ba1=ba1, wa2=wa2, ba2=ba2, wa3=wa3, ba3=ba3,
                w31=w31, b31=b31, w32=w32, b32=b32, w33=w33, b33=b33)


def pack_params(P):
    """Pack the 22 small parameters into 4 arrays (2 bf16 weight packs, 2 f32 packs)."""
    f32, bf16 = jnp.float32, jnp.bfloat16

    wp64 = jnp.zeros((WP64_ROWS, DF), f32)
    wp64 = wp64.at[W11_OFF:W11_OFF + INPUT_DIM].set(P["w11"])
    wf1 = jnp.concatenate([P["w21"], P["wa1"][:D1]], axis=1)                 # (32, 64)
    wp64 = wp64.at[WF1_OFF:WF1_OFF + D1].set(wf1)
    wf2 = jnp.zeros((DF, DF), f32)
    wf2 = wf2.at[:D2, :D2].set(P["w22"]).at[D2:, D2:].set(P["wa2"])          # block diag
    wp64 = wp64.at[WF2_OFF:WF2_OFF + DF].set(wf2)
    wa1g64 = jnp.zeros((D1, DF), f32).at[:, D2:].set(P["wa1"][D1:])          # [0 | wa1_g]
    wp64 = wp64.at[WA1G_OFF:WA1G_OFF + D1].set(wa1g64)
    wp64 = wp64.at[W31S_OFF:W31S_OFF + SELF_STATE_DIM].set(P["w31"][:SELF_STATE_DIM])
    wp64 = wp64.at[W31F_OFF:W31F_OFF + D2].set(P["w31"][SELF_STATE_DIM:])    # rows D2:DF stay 0
    wp64 = wp64.astype(bf16)

    wp32 = jnp.zeros((WP32_ROWS, D1), f32)
    wp32 = wp32.at[W12_OFF:W12_OFF + MLP1_DIMS[0]].set(P["w12"])
    wp32 = wp32.at[W32_OFF:W32_OFF + MLP3_DIMS[0]].set(P["w32"])
    wp32 = wp32.astype(bf16)

    bp64 = jnp.zeros((BP64_ROWS, DF), f32)
    bp64 = bp64.at[B11_ROW].set(P["b11"][0])
    bp64 = bp64.at[BF1_ROW].set(jnp.concatenate([P["b21"][0], P["ba1"][0]]))
    bp64 = bp64.at[BF2_ROW].set(jnp.concatenate([P["b22"][0], P["ba2"][0]]))
    bp64 = bp64.at[B31_ROW].set(P["b31"][0])
    bp64 = bp64.at[WA3_ROW, D2:].set(P["wa3"][:, 0])                         # [0 | wa3^T]

    bp32 = jnp.zeros((BP32_ROWS, D1), f32)
    bp32 = bp32.at[B12_ROW].set(P["b12"][0])
    bp32 = bp32.at[B32_ROW].set(P["b32"][0])
    bp32 = bp32.at[W33_ROW].set(P["w33"][:, 0])
    bp32 = bp32.at[BA3_ROW].set(jnp.full((D1,), P["ba3"][0, 0], f32))
    bp32 = bp32.at[B33_ROW].set(jnp.full((D1,), P["b33"][0, 0], f32))
    return wp64, wp32, bp64, bp32


# ------------------------ pure-JAX reference (for checking) ------------------------
def reference(state, P, cast_dtype=None):
    """PyTorch-faithful forward.  With cast_dtype=bf16 the matmul operands are cast
    exactly where the kernel casts them (the two 32->1 layers stay f32, as in the
    kernel's VPU path), so the comparison is tight."""
    f32 = jnp.float32

    def dot(a, w):
        if cast_dtype is not None:
            a, w = a.astype(cast_dtype), w.astype(cast_dtype)
        return jnp.dot(a, w, preferred_element_type=f32)

    B, N, Din = state.shape
    x = state.reshape(-1, Din)
    self_state = state[:, 0, :SELF_STATE_DIM]
    h = jax.nn.relu(dot(x, P["w11"]) + P["b11"])
    h1 = jax.nn.relu(dot(h, P["w12"]) + P["b12"])
    h2 = jax.nn.relu(dot(h1, P["w21"]) + P["b21"])
    m2 = dot(h2, P["w22"]) + P["b22"]
    g = jnp.mean(h1.reshape(B, N, -1), axis=1, keepdims=True)
    g = jnp.broadcast_to(g, (B, N, g.shape[-1])).reshape(-1, g.shape[-1])
    ai = jnp.concatenate([h1, g], axis=1)
    a = jax.nn.relu(dot(ai, P["wa1"]) + P["ba1"])
    a = jax.nn.relu(dot(a, P["wa2"]) + P["ba2"])
    scores = (a @ P["wa3"] + P["ba3"]).reshape(B, N)          # f32 (mirrors kernel VPU path)
    se = jnp.exp(scores) * (scores != 0).astype(f32)
    w = (se / jnp.sum(se, axis=1, keepdims=True))[..., None]
    wf = jnp.sum(w * m2.reshape(B, N, -1), axis=1)
    joint = jnp.concatenate([self_state, wf], axis=1)
    j = jax.nn.relu(dot(joint, P["w31"]) + P["b31"])
    j = jax.nn.relu(dot(j, P["w32"]) + P["b32"])
    return j @ P["w33"] + P["b33"]                            # f32 (mirrors kernel VPU path)


if __name__ == "__main__":
    key = jax.random.PRNGKey(0)
    pkey, skey, skey2 = jax.random.split(key, 3)
    params = init_params(pkey)
    packed = pack_params(params)

    # small demo: batch=2, 8 humans, 13-dim rotated state (single tiny block, tb=8)
    B, N = 2, 8
    state = jax.random.normal(skey, (B, N, INPUT_DIM), dtype=jnp.float32)
    out = jax.block_until_ready(value_network(state, packed))
    ref = reference(state, params, cast_dtype=jnp.bfloat16)
    assert out.shape == (B, MLP3_DIMS[-1])
    assert jnp.allclose(out, ref, atol=1e-2, rtol=1e-2), (out, ref)

    # larger batch exercising multiple grid blocks + batch padding
    B2 = 300
    state2 = jax.random.normal(skey2, (B2, N, INPUT_DIM), dtype=jnp.float32)
    out2 = jax.block_until_ready(value_network(state2, packed))
    ref2 = reference(state2, params, cast_dtype=jnp.bfloat16)
    assert out2.shape == (B2, MLP3_DIMS[-1])
    assert jnp.allclose(out2, ref2, atol=1e-2, rtol=1e-2)

    print("KERNEL_OK")
</pallas_src>

<mosaic_0001>
module attributes {stable_mosaic.version = 11 : i64} {
  func.func @_value_kernel(%arg0: i32, %arg1: memref<8x8x13xf32, #tpu.memory_space<vmem>>, %arg2: memref<224x64xbf16, #tpu.memory_space<vmem>>, %arg3: memref<128x32xbf16, #tpu.memory_space<vmem>>, %arg4: memref<8x64xf32, #tpu.memory_space<vmem>>, %arg5: memref<8x32xf32, #tpu.memory_space<vmem>>, %arg6: memref<1x8xf32, #tpu.memory_space<vmem>>) attributes {dimension_semantics = [#tpu.dimension_semantics<parallel>], iteration_bounds = array<i64: 1>, scalar_prefetch = 0 : i64, scratch_operands = 0 : i64, tpu.core_type = #tpu.core_type<tc>, window_params = [{transform_indices = @transform_0, window_bounds = array<i64: 8, 8, 13>}, {pipeline_mode = #tpu.pipeline_mode<synchronous>, transform_indices = @transform_1, window_bounds = array<i64: 224, 64>}, {pipeline_mode = #tpu.pipeline_mode<synchronous>, transform_indices = @transform_2, window_bounds = array<i64: 128, 32>}, {pipeline_mode = #tpu.pipeline_mode<synchronous>, transform_indices = @transform_3, window_bounds = array<i64: 8, 64>}, {pipeline_mode = #tpu.pipeline_mode<synchronous>, transform_indices = @transform_4, window_bounds = array<i64: 8, 32>}, {transform_indices = @transform_5, window_bounds = array<i64: 1, 8>}]} {
    %c0 = arith.constant 0 : index
    %c0_0 = arith.constant 0 : index
    %c0_1 = arith.constant 0 : index
    %0 = vector.load %arg1[%c0, %c0_0, %c0_1] : memref<8x8x13xf32, #tpu.memory_space<vmem>>, vector<8x8x13xf32>
    %1 = vector.shape_cast %0 : vector<8x8x13xf32> to vector<64x13xf32>
    %c0_2 = arith.constant 0 : index
    %c0_3 = arith.constant 0 : index
    %2 = vector.load %arg2[%c0_2, %c0_3] : memref<224x64xbf16, #tpu.memory_space<vmem>>, vector<13x64xbf16>
    %c16 = arith.constant 16 : index
    %c0_4 = arith.constant 0 : index
    %3 = vector.load %arg2[%c16, %c0_4] : memref<224x64xbf16, #tpu.memory_space<vmem>>, vector<32x64xbf16>
    %c48 = arith.constant 48 : index
    %c0_5 = arith.constant 0 : index
    %4 = vector.load %arg2[%c48, %c0_5] : memref<224x64xbf16, #tpu.memory_space<vmem>>, vector<64x64xbf16>
    %c112 = arith.constant 112 : index
    %c0_6 = arith.constant 0 : index
    %5 = vector.load %arg2[%c112, %c0_6] : memref<224x64xbf16, #tpu.memory_space<vmem>>, vector<32x64xbf16>
    %c144 = arith.constant 144 : index
    %c0_7 = arith.constant 0 : index
    %6 = vector.load %arg2[%c144, %c0_7] : memref<224x64xbf16, #tpu.memory_space<vmem>>, vector<6x64xbf16>
    %c160 = arith.constant 160 : index
    %c0_8 = arith.constant 0 : index
    %7 = vector.load %arg2[%c160, %c0_8] : memref<224x64xbf16, #tpu.memory_space<vmem>>, vector<64x64xbf16>
    %c0_9 = arith.constant 0 : index
    %c0_10 = arith.constant 0 : index
    %8 = vector.load %arg3[%c0_9, %c0_10] : memref<128x32xbf16, #tpu.memory_space<vmem>>, vector<64x32xbf16>
    %c64 = arith.constant 64 : index
    %c0_11 = arith.constant 0 : index
    %9 = vector.load %arg3[%c64, %c0_11] : memref<128x32xbf16, #tpu.memory_space<vmem>>, vector<64x32xbf16>
    %c0_12 = arith.constant 0 : index
    %c0_13 = arith.constant 0 : index
    %10 = vector.load %arg4[%c0_12, %c0_13] : memref<8x64xf32, #tpu.memory_space<vmem>>, vector<1x64xf32>
    %c1 = arith.constant 1 : index
    %c0_14 = arith.constant 0 : index
    %11 = vector.load %arg4[%c1, %c0_14] : memref<8x64xf32, #tpu.memory_space<vmem>>, vector<1x64xf32>
    %c2 = arith.constant 2 : index
    %c0_15 = arith.constant 0 : index
    %12 = vector.load %arg4[%c2, %c0_15] : memref<8x64xf32, #tpu.memory_space<vmem>>, vector<1x64xf32>
    %c3 = arith.constant 3 : index
    %c0_16 = arith.constant 0 : index
    %13 = vector.load %arg4[%c3, %c0_16] : memref<8x64xf32, #tpu.memory_space<vmem>>, vector<1x64xf32>
    %c4 = arith.constant 4 : index
    %c0_17 = arith.constant 0 : index
    %14 = vector.load %arg4[%c4, %c0_17] : memref<8x64xf32, #tpu.memory_space<vmem>>, vector<1x64xf32>
    %c0_18 = arith.constant 0 : index
    %c0_19 = arith.constant 0 : index
    %15 = vector.load %arg5[%c0_18, %c0_19] : memref<8x32xf32, #tpu.memory_space<vmem>>, vector<1x32xf32>
    %c1_20 = arith.constant 1 : index
    %c0_21 = arith.constant 0 : index
    %16 = vector.load %arg5[%c1_20, %c0_21] : memref<8x32xf32, #tpu.memory_space<vmem>>, vector<1x32xf32>
    %c2_22 = arith.constant 2 : index
    %c0_23 = arith.constant 0 : index
    %17 = vector.load %arg5[%c2_22, %c0_23] : memref<8x32xf32, #tpu.memory_space<vmem>>, vector<1x32xf32>
    %c3_24 = arith.constant 3 : index
    %c0_25 = arith.constant 0 : index
    %18 = vector.load %arg5[%c3_24, %c0_25] : memref<8x32xf32, #tpu.memory_space<vmem>>, vector<1x1xf32>
    %c4_26 = arith.constant 4 : index
    %c0_27 = arith.constant 0 : index
    %19 = vector.load %arg5[%c4_26, %c0_27] : memref<8x32xf32, #tpu.memory_space<vmem>>, vector<1x1xf32>
    %20 = arith.truncf %1 : vector<64x13xf32> to vector<64x13xbf16>
    %cst = arith.constant dense<0.000000e+00> : vector<64x64xf32>
    %21 = tpu.matmul %20, %2, %cst {dimension_numbers = #tpu.dot_dimension_numbers<[1], [0], [0], [1], [0, 0, 1, 1], [], []>} : vector<64x13xbf16>, vector<13x64xbf16>, vector<64x64xf32> -> vector<64x64xf32>
    %22 = vector.broadcast %10 : vector<1x64xf32> to vector<64x64xf32>
    %23 = arith.addf %21, %22 : vector<64x64xf32>
    %cst_28 = arith.constant 0.000000e+00 : f32
    %24 = vector.broadcast %cst_28 : f32 to vector<64x64xf32>
    %25 = arith.maximumf %23, %24 : vector<64x64xf32>
    %26 = arith.truncf %25 : vector<64x64xf32> to vector<64x64xbf16>
    %cst_29 = arith.constant dense<0.000000e+00> : vector<64x32xf32>
    %27 = tpu.matmul %26, %8, %cst_29 {dimension_numbers = #tpu.dot_dimension_numbers<[1], [0], [0], [1], [0, 0, 1, 1], [], []>} : vector<64x64xbf16>, vector<64x32xbf16>, vector<64x32xf32> -> vector<64x32xf32>
    %28 = vector.broadcast %15 : vector<1x32xf32> to vector<64x32xf32>
    %29 = arith.addf %27, %28 : vector<64x32xf32>
    %cst_30 = arith.constant 0.000000e+00 : f32
    %30 = vector.broadcast %cst_30 : f32 to vector<64x32xf32>
    %31 = arith.maximumf %29, %30 : vector<64x32xf32>
    %32 = vector.shape_cast %31 : vector<64x32xf32> to vector<8x8x32xf32>
    %cst_31 = arith.constant dense<0.000000e+00> : vector<8x32xf32>
    %33 = vector.multi_reduction <add>, %32, %cst_31 [1] : vector<8x8x32xf32> to vector<8x32xf32>
    %cst_32 = arith.constant 8.000000e+00 : f32
    %34 = vector.broadcast %cst_32 : f32 to vector<8x32xf32>
    %35 = arith.divf %33, %34 : vector<8x32xf32>
    %36 = arith.truncf %35 : vector<8x32xf32> to vector<8x32xbf16>
    %cst_33 = arith.constant dense<0.000000e+00> : vector<8x64xf32>
    %37 = tpu.matmul %36, %5, %cst_33 {dimension_numbers = #tpu.dot_dimension_numbers<[1], [0], [0], [1], [0, 0, 1, 1], [], []>} : vector<8x32xbf16>, vector<32x64xbf16>, vector<8x64xf32> -> vector<8x64xf32>
    %38 = arith.truncf %31 : vector<64x32xf32> to vector<64x32xbf16>
    %cst_34 = arith.constant dense<0.000000e+00> : vector<64x64xf32>
    %39 = tpu.matmul %38, %3, %cst_34 {dimension_numbers = #tpu.dot_dimension_numbers<[1], [0], [0], [1], [0, 0, 1, 1], [], []>} : vector<64x32xbf16>, vector<32x64xbf16>, vector<64x64xf32> -> vector<64x64xf32>
    %40 = vector.broadcast %11 : vector<1x64xf32> to vector<64x64xf32>
    %41 = arith.addf %39, %40 : vector<64x64xf32>
    %42 = vector.shape_cast %41 : vector<64x64xf32> to vector<8x8x64xf32>
    %43 = vector.shape_cast %37 : vector<8x64xf32> to vector<8x1x64xf32>
    %44 = vector.broadcast %43 : vector<8x1x64xf32> to vector<8x8x64xf32>
    %45 = arith.addf %42, %44 : vector<8x8x64xf32>
    %cst_35 = arith.constant 0.000000e+00 : f32
    %46 = vector.broadcast %cst_35 : f32 to vector<8x8x64xf32>
    %47 = arith.maximumf %45, %46 : vector<8x8x64xf32>
    %48 = vector.shape_cast %47 : vector<8x8x64xf32> to vector<64x64xf32>
    %49 = arith.truncf %48 : vector<64x64xf32> to vector<64x64xbf16>
    %cst_36 = arith.constant dense<0.000000e+00> : vector<64x64xf32>
    %50 = tpu.matmul %49, %4, %cst_36 {dimension_numbers = #tpu.dot_dimension_numbers<[1], [0], [0], [1], [0, 0, 1, 1], [], []>} : vector<64x64xbf16>, vector<64x64xbf16>, vector<64x64xf32> -> vector<64x64xf32>
    %51 = vector.broadcast %12 : vector<1x64xf32> to vector<64x64xf32>
    %52 = arith.addf %50, %51 : vector<64x64xf32>
    %53 = vector.shape_cast %52 : vector<64x64xf32> to vector<8x8x64xf32>
    %cst_37 = arith.constant 0.000000e+00 : f32
    %54 = vector.broadcast %cst_37 : f32 to vector<8x8x64xf32>
    %55 = arith.maximumf %53, %54 : vector<8x8x64xf32>
    %56 = vector.shape_cast %14 : vector<1x64xf32> to vector<1x1x64xf32>
    %57 = vector.broadcast %56 : vector<1x1x64xf32> to vector<8x8x64xf32>
    %58 = arith.mulf %55, %57 : vector<8x8x64xf32>
    %cst_38 = arith.constant dense<0.000000e+00> : vector<8x8xf32>
    %59 = vector.multi_reduction <add>, %58, %cst_38 [2] : vector<8x8x64xf32> to vector<8x8xf32>
    %60 = vector.shape_cast %59 : vector<8x8xf32> to vector<8x8x1xf32>
    %61 = vector.shape_cast %18 : vector<1x1xf32> to vector<1x1x1xf32>
    %62 = vector.broadcast %61 : vector<1x1x1xf32> to vector<8x8x1xf32>
    %63 = arith.addf %60, %62 : vector<8x8x1xf32>
    %64 = math.exp %63 : vector<8x8x1xf32>
    %cst_39 = arith.constant 0.000000e+00 : f32
    %65 = vector.broadcast %cst_39 : f32 to vector<8x8x1xf32>
    %66 = arith.cmpf one, %63, %65 : vector<8x8x1xf32>
    %67 = arith.extui %66 : vector<8x8x1xi1> to vector<8x8x1xi32>
    %68 = arith.sitofp %67 : vector<8x8x1xi32> to vector<8x8x1xf32>
    %69 = arith.mulf %64, %68 : vector<8x8x1xf32>
    %cst_40 = arith.constant dense<0.000000e+00> : vector<8x1xf32>
    %70 = vector.multi_reduction <add>, %69, %cst_40 [1] : vector<8x8x1xf32> to vector<8x1xf32>
    %71 = vector.shape_cast %70 : vector<8x1xf32> to vector<8x1x1xf32>
    %72 = vector.broadcast %71 : vector<8x1x1xf32> to vector<8x8x1xf32>
    %73 = arith.divf %69, %72 : vector<8x8x1xf32>
    %74 = vector.broadcast %73 : vector<8x8x1xf32> to vector<8x8x64xf32>
    %75 = arith.mulf %74, %53 : vector<8x8x64xf32>
    %cst_41 = arith.constant dense<0.000000e+00> : vector<8x64xf32>
    %76 = vector.multi_reduction <add>, %75, %cst_41 [1] : vector<8x8x64xf32> to vector<8x64xf32>
    %77 = vector.extract_strided_slice %0 {offsets = [0, 0, 0], sizes = [8, 1, 6], strides = [1, 1, 1]} : vector<8x8x13xf32> to vector<8x1x6xf32>
    %78 = vector.shape_cast %77 : vector<8x1x6xf32> to vector<8x6xf32>
    %79 = arith.truncf %78 : vector<8x6xf32> to vector<8x6xbf16>
    %cst_42 = arith.constant dense<0.000000e+00> : vector<8x64xf32>
    %80 = tpu.matmul %79, %6, %cst_42 {dimension_numbers = #tpu.dot_dimension_numbers<[1], [0], [0], [1], [0, 0, 1, 1], [], []>} : vector<8x6xbf16>, vector<6x64xbf16>, vector<8x64xf32> -> vector<8x64xf32>
    %81 = arith.truncf %76 : vector<8x64xf32> to vector<8x64xbf16>
    %cst_43 = arith.constant dense<0.000000e+00> : vector<8x64xf32>
    %82 = tpu.matmul %81, %7, %cst_43 {dimension_numbers = #tpu.dot_dimension_numbers<[1], [0], [0], [1], [0, 0, 1, 1], [], []>} : vector<8x64xbf16>, vector<64x64xbf16>, vector<8x64xf32> -> vector<8x64xf32>
    %83 = arith.addf %80, %82 : vector<8x64xf32>
    %84 = vector.broadcast %13 : vector<1x64xf32> to vector<8x64xf32>
    %85 = arith.addf %83, %84 : vector<8x64xf32>
    %cst_44 = arith.constant 0.000000e+00 : f32
    %86 = vector.broadcast %cst_44 : f32 to vector<8x64xf32>
    %87 = arith.maximumf %85, %86 : vector<8x64xf32>
    %88 = arith.truncf %87 : vector<8x64xf32> to vector<8x64xbf16>
    %cst_45 = arith.constant dense<0.000000e+00> : vector<8x32xf32>
    %89 = tpu.matmul %88, %9, %cst_45 {dimension_numbers = #tpu.dot_dimension_numbers<[1], [0], [0], [1], [0, 0, 1, 1], [], []>} : vector<8x64xbf16>, vector<64x32xbf16>, vector<8x32xf32> -> vector<8x32xf32>
    %90 = vector.broadcast %16 : vector<1x32xf32> to vector<8x32xf32>
    %91 = arith.addf %89, %90 : vector<8x32xf32>
    %cst_46 = arith.constant 0.000000e+00 : f32
    %92 = vector.broadcast %cst_46 : f32 to vector<8x32xf32>
    %93 = arith.maximumf %91, %92 : vector<8x32xf32>
    %94 = vector.broadcast %17 : vector<1x32xf32> to vector<8x32xf32>
    %95 = arith.mulf %93, %94 : vector<8x32xf32>
    %cst_47 = arith.constant dense<0.000000e+00> : vector<8xf32>
    %96 = vector.multi_reduction <add>, %95, %cst_47 [1] : vector<8x32xf32> to vector<8xf32>
    %97 = vector.shape_cast %96 : vector<8xf32> to vector<1x8xf32>
    %98 = vector.broadcast %19 : vector<1x1xf32> to vector<1x8xf32>
    %99 = arith.addf %97, %98 : vector<1x8xf32>
    %c0_48 = arith.constant 0 : index
    %c0_49 = arith.constant 0 : index
    %100 = vector.load %arg6[%c0_48, %c0_49] : memref<1x8xf32, #tpu.memory_space<vmem>>, vector<1x8xf32>
    tpu.vector_store %arg6[%c0_48, %c0_49], %99 {strides = array<i32>} : memref<1x8xf32, #tpu.memory_space<vmem>>, vector<1x8xf32>,
    return
  }
  func.func @transform_0(%arg0: i32) -> (i32, i32, i32) {
    %c0_i32 = arith.constant 0 : i32
    %c0_i32_0 = arith.constant 0 : i32
    %c0_i32_1 = arith.constant 0 : i32
    return %arg0, %c0_i32, %c0_i32_0 : i32, i32, i32
  }
  func.func @transform_1(%arg0: i32) -> (i32, i32) {
    %c0_i32 = arith.constant 0 : i32
    %c0_i32_0 = arith.constant 0 : i32
    %c0_i32_1 = arith.constant 0 : i32
    return %c0_i32, %c0_i32_0 : i32, i32
  }
  func.func @transform_2(%arg0: i32) -> (i32, i32) {
    %c0_i32 = arith.constant 0 : i32
    %c0_i32_0 = arith.constant 0 : i32
    %c0_i32_1 = arith.constant 0 : i32
    return %c0_i32, %c0_i32_0 : i32, i32
  }
  func.func @transform_3(%arg0: i32) -> (i32, i32) {
    %c0_i32 = arith.constant 0 : i32
    %c0_i32_0 = arith.constant 0 : i32
    %c0_i32_1 = arith.constant 0 : i32
    return %c0_i32, %c0_i32_0 : i32, i32
  }
  func.func @transform_4(%arg0: i32) -> (i32, i32) {
    %c0_i32 = arith.constant 0 : i32
    %c0_i32_0 = arith.constant 0 : i32
    %c0_i32_1 = arith.constant 0 : i32
    return %c0_i32, %c0_i32_0 : i32, i32
  }
  func.func @transform_5(%arg0: i32) -> (i32, i32) {
    %c0_i32 = arith.constant 0 : i32
    %c0_i32_0 = arith.constant 0 : i32
    return %arg0, %c0_i32 : i32, i32
  }
}

</mosaic_0001>

<bundles_post_ra>
// kernel: tpu_custom_call.1
= control target key start
LH: loop header
LB: loop body
LE: loop exit
PB: predicated region body
PF: predicated region fallthrough
CT: control target
= control target key end

     0   :  { %vm109_vm0 = vcmask 1045504   ;;  %vm110_vm1 = vcmask 1046528   ;;  %vm96_vm2 = vcmask 105472   ;;  %v1645_v3 = vmov 65535   ;;  %s2052_s0 = inlined_call_operand.vmem [shape: f32[8,8,13], index: 0, kind: input, shape index: {}]   ;;  %s2053_s1 = inlined_call_operand.vmem [shape: bf16[224,64], index: 1, kind: input, shape index: {}]   ;;  %s2054_s2 = inlined_call_operand.vmem [shape: bf16[128,32], index: 2, kind: input, shape index: {}]   ;;  %s2055_s3 = inlined_call_operand.vmem [shape: f32[8,64], index: 3, kind: input, shape index: {}]   ;;  %s2056_s4 = inlined_call_operand.vmem [shape: f32[8,32], index: 4, kind: input, shape index: {}]   ;;  %s2057_s5 = inlined_call_operand.hbm [shape: f32[1,8], index: 5, kind: output, shape index: {}]  }
   0x1   :  { %v1570_v0 = vld [vmem:[%s2053_s1] sm:$0x7f]   ;;  %v23_v2 = vld [vmem:[%s2052_s0 + $0x8] sm:$0xff]  ;;  %v111_v4 = vsel %vm109_vm0, 4294967295, %v1645_v3  ;;  %v24_v7 = vld [vmem:[%s2052_s0 + $0x10] sm:$0xff]  ;;  %vm397_vm3 = vcmask 1041409  }
   0x2   :  { %v22_v1 = vld [vmem:[%s2052_s0] sm:$0xff]  ;;  %v112_v8 = vsel %vm110_vm1, %v111_v4, 0  ;;  %v1061_v9 = vpack.c.bf16 %v23_v2, %v23_v2  ;;  %v25_v10 = vld [vmem:[%s2052_s0 + $0x18] sm:$0xff]  ;;  %v1702_v12 = vld [vmem:[%s2052_s0 + $0x28] sm:$0xff]  ;;  %v1062_v14 = vpack.c.bf16 %v24_v7, %v24_v7  ;;  %vm399_vm4 = vcmask 1042434  }
   0x3   :  { %v83_v5 = vpack.c.bf16 %v23_v2, %v22_v1  ;;  %v1060_v6 = vpack.c.bf16 %v22_v1, %v22_v1  ;;  %v26_v11 = vld [vmem:[%s2052_s0 + $0x20] sm:$0xff]  ;;  %v114_v13 = vand.u32 %v1570_v0, %v112_v8  ;;  %v1571_v15 = vld [vmem:[%s2054_s2 + $0x18] sm:$0xff]   ;;  %v1063_v18 = vpack.c.bf16 %v25_v10, %v25_v10  ;;  %v28_v29 = vld [vmem:[%s2052_s0 + $0x30] sm:$0xff] }
   0x4   :  { %v1176_v17 = vunpack.c.l.b16 %v1061_v9  ;;  %v84_v19 = vpack.c.bf16 %v25_v10, %v24_v7  ;;  %v1177_v20 = vunpack.c.l.b16 %v1062_v14  ;;  %v1064_v21 = vpack.c.bf16 %v26_v11, %v26_v11  ;;  %v29_v33 = vld [vmem:[%s2052_s0 + $0x38] sm:$0xff] }
   0x5   :  { %1472 = vmatprep.mubr.msk.bf16.mxu1 %vm96_vm2, %v83_v5  ;;  %v1175_v16 = vunpack.c.l.b16 %v1060_v6  ;;  %1470 = vmatprep.subr.bf16.mxu1 %v114_v13  ;;  %v1178_v23 = vunpack.c.l.b16 %v1063_v18  ;;  %v85_v24 = vpack.c.bf16 %v1702_v12, %v26_v11  ;;  %vm401_vm5 = vcmask 1043459  }
   0x6   :  { %1471 = vmatpush3.bf16.msra.mxu1 %v114_v13  ;;  %v1183_v22 = vrot.slane %v1176_v17, 7  ;;  %v1185_v25 = vrot.slane %v1177_v20, 6  ;;  %v1179_v26 = vunpack.c.l.b16 %v1064_v21  ;;  %vm403_vm6 = vcmask 1044484  }
   0x7   :  { %1480 = vmatprep.subr.bf16.mxu1 %v1571_v15  ;;  %v1187_v28 = vrot.slane %v1178_v23, 5  ;;  %v86_v35 = vpack.c.bf16 %v29_v33, %v28_v29 }
   0x8   :  { %v1184_v27 = vsel %vm397_vm3, %v1183_v22, %v1175_v16  ;;  %v1189_v31 = vrot.slane %v1179_v26, 4 }
   0x9   :  { %1473 = vmatmul.mubr.msk.bf16.vlgmr.msra.gmra.mxu1 %vm96_vm2, %v84_v19  ;;  %v1186_v30 = vsel %vm399_vm4, %v1185_v25, %v1184_v27 }
   0xa   :  { %v1188_v32 = vsel %vm401_vm5, %v1187_v28, %v1186_v30  ;;  %1476 = vmatprep.mubr.msk.bf16.mxu1 %vm96_vm2, %v85_v24  ;;  %1481 = vmatpush3.bf16.msra.mxu1 %v1571_v15 }
   0xb   :  { %v1721_v34 = vsel %vm403_vm6, %v1189_v31, %v1188_v32 }
  0x11   :  { %1477 = vmatmul.mubr.msk.bf16.gmra.mxu1 %vm96_vm2, %v86_v35 }
  0x12   :  { %10 = vsyncpa [#allocation3], 0  ;;  %v1572_v36 = vld [vmem:[%s2054_s2 + $0x10] sm:$0xff]   ;;  %v1573_v37 = vld [vmem:[%s2054_s2 + $0x8] sm:$0xff]   ;;  %vm221_vm7 = vcmask 523264   ;;  %v1065_v4 = vpack.c.bf16 %v1702_v12, %v1702_v12  ;;  %v1066_v5 = vpack.c.bf16 %v28_v29, %v28_v29  ;;  %v1067_v6 = vpack.c.bf16 %v29_v33, %v29_v33 }
  0x13   :  { %1482 = vmatprep.subr.bf16.mxu1 %v1572_v36  ;;  %v1574_v38 = vld [vmem:[%s2054_s2] sm:$0xff]   ;;  %v1646_v10 = vmov 0.0   ;;  %v1576_v13 = vld [vmem:[%s2053_s1 + $0x38] sm:$0xff]   ;;  %vm1647_vm8 = vmmov 0   ;;  %v1755_v12 = vld [vmem:[%s2053_s1 + $0x10] sm:$0xff]   ;;  %vm405_vm9 = vcmask 1045509  }
  0x14   :  { %1483 = vmatpush3.bf16.msra.mxu1 %v1572_v36  ;;  %v1370_v41 = vld [vmem:[%s2055_s3] ss:$0 sm:$0xff]  ;;  %v1180_v7 = vunpack.c.l.b16 %v1065_v4  ;;  %v1181_v9 = vunpack.c.l.b16 %v1066_v5  ;;  %1496 = vmatprep.subr.bf16.mxu0 %v1646_v10  ;;  %v1182_v11 = vunpack.c.l.b16 %v1067_v6  ;;  %vm407_vm10 = vcmask 1046534  }
  0x15   :  { %1484 = vmatprep.subr.bf16.mxu1 %v1573_v37  ;;  %v1575_v8 = vld [vmem:[%s2053_s1 + $0x40] sm:$0xff]   ;;  %1500 = vmatprep.mubr.msk.bf16.mxu0 %vm1647_vm8, %v1646_v10  ;;  %vm409_vm11 = vcmask 1047559   ;;  %vm307_vm12 = vcmask 261120   ;;  %vm883_vm15 = vcmask 7168  }
  0x16   :  { %1497 = vmatpush3.bf16.msra.mxu0 %v1575_v8  ;;  %v1191_v14 = vrot.slane %v1180_v7, 3  ;;  %v1193_v15 = vrot.slane %v1181_v9, 2  ;;  %v1195_v16 = vrot.slane %v1182_v11, 1  ;;  %v1376_v20 = vld [vmem:[%s2056_s4] ss:$0 sm:$0xff] }
  0x17   :  { %1498 = vmatprep.subr.bf16.mxu0 %v1646_v10 }
  0x18   :  { %1485 = vmatpush3.bf16.msra.mxu1 %v1573_v37  ;;  %v1192_v17 = vsel %vm405_vm9, %v1191_v14, %v1721_v34 }
  0x19   :  { %1486 = vmatprep.subr.bf16.mxu1 %v1574_v38  ;;  %v1194_v18 = vsel %vm407_vm10, %v1193_v15, %v1192_v17 }
  0x1a   :  { %1499 = vmatpush3.bf16.msra.mxu0 %v1576_v13  ;;  %v1762_v19 = vsel %vm409_vm11, %v1195_v16, %v1194_v18 }
  0x1b   :  { %1504 = vmatprep.subr.bf16.mxu0 %v1755_v12 }
  0x1c   :  { %1487 = vmatpush3.bf16.msra.mxu1 %v1574_v38 }
  0xc9   :  { %v1474_v39 = vpop.f32.mrf.mxu1 }
  0xca   :  { %v159_v45 = vadd.f32 %v1474_v39, %v1370_v41 }
  0xcb   :  { %v150_v40 = vpop.f32.mrf.mxu1 }
  0xcc   :  { %v151_v43 = vadd.f32 %v1370_v41, %v150_v40  ;;  %v183_v52 = vmax.f32 %v159_v45, 0.0 }
  0xcd   :  { %v1475_v42 = vpop.f32.mrf.mxu1 }
  0xce   :  { %v162_v44 = vadd.f32 %v1475_v42, %v1370_v41  ;;  %v181_v50 = vmax.f32 %v151_v43, 0.0 }
  0xcf   :  { %v153_v46 = vpop.f32.mrf.mxu1 }
  0xd0   :  { %v154_v47 = vadd.f32 %v1370_v41, %v153_v46  ;;  %v184_v48 = vmax.f32 %v162_v44, 0.0 }
  0xd1   :  { %v1478_v49 = vpop.f32.mrf.mxu1 }
  0xd2   :  { %v182_v51 = vmax.f32 %v154_v47, 0.0  ;;  %v190_v55 = vpack.c.bf16 %v184_v48, %v183_v52  ;;  %v175_v59 = vadd.f32 %v1478_v49, %v1370_v41 }
  0xd3   :  { %v166_v53 = vpop.f32.mrf.mxu1 }
  0xd4   :  { %v189_v54 = vpack.c.bf16 %v182_v51, %v181_v50  ;;  %v167_v57 = vadd.f32 %v1370_v41, %v166_v53  ;;  %v187_v1 = vmax.f32 %v175_v59, 0.0 }
  0xd5   :  { %v1479_v56 = vpop.f32.mrf.mxu1 }
  0xd6   :  { %v178_v58 = vadd.f32 %v1479_v56, %v1370_v41  ;;  %1488 = vmatprep.mubr.msk.bf16.mxu1 %vm221_vm7, %v189_v54  ;;  %v185_v63 = vmax.f32 %v167_v57, 0.0 }
  0xd7   :  { %v169_v60 = vpop.f32.mrf.mxu1  ;;  %1489 = vmatmul.mubr.msk.bf16.vlgmr.msra.gmra.mxu1 %vm221_vm7, %v190_v55 }
  0xd8   :  { %v170_v61 = vadd.f32 %v1370_v41, %v169_v60  ;;  %v188_v62 = vmax.f32 %v178_v58, 0.0 }
  0xda   :  { %v186_v0 = vmax.f32 %v170_v61, 0.0  ;;  %v192_v3 = vpack.c.bf16 %v188_v62, %v187_v1 }
  0xdc   :  { %v191_v2 = vpack.c.bf16 %v186_v0, %v185_v63 }
  0xde   :  { %1492 = vmatprep.mubr.msk.bf16.mxu1 %vm221_vm7, %v191_v2 }
  0xdf   :  { %1493 = vmatmul.mubr.msk.bf16.gmra.mxu1 %vm221_vm7, %v192_v3 }
 0x197   :  { %v1490_v21 = vpop.f32.mrf.mxu1 }
 0x198   :  { %v1767_v22 = vadd.f32 %v1490_v21, %v1376_v20 }
 0x199   :  { %v268_v23 = vpop.f32.mrf.mxu1 }
 0x19a   :  { %v301_v24 = vmax.f32 %v1767_v22, 0.0  ;;  %v1770_v25 = vadd.f32 %v1376_v20, %v268_v23  ;;  %v1579_v22 = vld [vmem:[%s2053_s1 + $0x30] sm:$0xff]  }
 0x19b   :  { %v1491_v26 = vpop.f32.mrf.mxu1  ;;  %1516 = vmatprep.subr.bf16.mxu1 %v1579_v22 }
 0x19c   :  { %v322_v27 = vsel %vm307_vm12, %v301_v24, 0.0  ;;  %v299_v28 = vmax.f32 %v1770_v25, 0.0  ;;  %v1776_v29 = vadd.f32 %v1491_v26, %v1376_v20  ;;  %1517 = vmatpush3.bf16.msra.mxu1 %v1579_v22 }
 0x19d   :  { %v323_v30 = vrot.slane %v322_v27, 4  ;;  %v271_v31 = vpop.f32.mrf.mxu1 }
 0x19e   :  { %v308_v32 = vsel %vm307_vm12, %v299_v28, 0.0  ;;  %v302_v33 = vmax.f32 %v1776_v29, 0.0  ;;  %v1782_v34 = vadd.f32 %v1376_v20, %v271_v31  ;;  %v1582_v29 = vld [vmem:[%s2053_s1 + $0x18] sm:$0xff]  }
 0x19f   :  { %v324_v35 = vadd.f32 %v323_v30, %v322_v27  ;;  %v309_v36 = vrot.slane %v308_v32, 4  ;;  %v1494_v37 = vpop.f32.mrf.mxu1 }
 0x1a0   :  { %v329_v38 = vsel %vm307_vm12, %v302_v33, 0.0  ;;  %v300_v39 = vmax.f32 %v1782_v34, 0.0  ;;  %v1788_v40 = vadd.f32 %v1494_v37, %v1376_v20 }
 0x1a1   :  { %v325_v41 = vrot.slane %v324_v35, 2  ;;  %v310_v42 = vadd.f32 %v309_v36, %v308_v32  ;;  %v330_v43 = vrot.slane %v329_v38, 4  ;;  %v284_v44 = vpop.f32.mrf.mxu1 }
 0x1a2   :  { %v315_v45 = vsel %vm307_vm12, %v300_v39, 0.0  ;;  %v305_v46 = vmax.f32 %v1788_v40, 0.0  ;;  %v1794_v47 = vadd.f32 %v1376_v20, %v284_v44 }
 0x1a3   :  { %v326_v48 = vadd.f32 %v325_v41, %v324_v35  ;;  %v311_v49 = vrot.slane %v310_v42, 2  ;;  %v331_v50 = vadd.f32 %v330_v43, %v329_v38  ;;  %v316_v51 = vrot.slane %v315_v45, 4  ;;  %v1495_v52 = vpop.f32.mrf.mxu1 }
 0x1a4   :  { %v350_v53 = vsel %vm307_vm12, %v305_v46, 0.0  ;;  %v303_v54 = vmax.f32 %v1794_v47, 0.0  ;;  %v1800_v55 = vadd.f32 %v1495_v52, %v1376_v20 }
 0x1a5   :  { %v312_v56 = vadd.f32 %v311_v49, %v310_v42  ;;  %v332_v57 = vrot.slane %v331_v50, 2  ;;  %v317_v58 = vadd.f32 %v316_v51, %v315_v45  ;;  %v287_v59 = vpop.f32.mrf.mxu1  ;;  %v351_v60 = vrot.slane %v350_v53, 4 }
 0x1a6   :  { %v336_v61 = vsel %vm307_vm12, %v303_v54, 0.0  ;;  %v306_v62 = vmax.f32 %v1800_v55, 0.0  ;;  %v1806_v63 = vadd.f32 %v1376_v20, %v287_v59  ;;  %v327_v0 = vrot.slane %v326_v48, 1 }
 0x1a7   :  { %v313_v1 = vrot.slane %v312_v56, 1  ;;  %v333_v2 = vadd.f32 %v332_v57, %v331_v50  ;;  %v318_v3 = vrot.slane %v317_v58, 2  ;;  %v352_v4 = vadd.f32 %v351_v60, %v350_v53 }
 0x1a8   :  { %v337_v5 = vrot.slane %v336_v61, 4  ;;  %v357_v6 = vsel %vm307_vm12, %v306_v62, 0.0  ;;  %v304_v14 = vmax.f32 %v1806_v63, 0.0  ;;  %v328_v15 = vadd.f32 %v327_v0, %v326_v48 }
 0x1a9   :  { %v314_v7 = vadd.f32 %v313_v1, %v312_v56  ;;  %v319_v8 = vadd.f32 %v318_v3, %v317_v58  ;;  %v353_v9 = vrot.slane %v352_v4, 2  ;;  %v358_v13 = vrot.slane %v357_v6, 4 }
 0x1aa   :  { %v338_v11 = vadd.f32 %v337_v5, %v336_v61  ;;  %v334_v16 = vrot.slane %v333_v2, 1  ;;  %v343_v23 = vsel %vm307_vm12, %v304_v14, 0.0  ;;  %v367_v35 = vmul.f32 0.125, %v328_v15 }
 0x1ab   :  { %v320_v17 = vrot.slane %v319_v8, 1  ;;  %v354_v18 = vadd.f32 %v353_v9, %v352_v4  ;;  %v359_v21 = vadd.f32 %v358_v13, %v357_v6  ;;  %v365_v26 = vmul.f32 0.125, %v314_v7 }
 0x1ac   :  { %v339_v20 = vrot.slane %v338_v11, 2  ;;  %v344_v32 = vrot.slane %v343_v23, 4  ;;  %v335_v36 = vadd.f32 %v334_v16, %v333_v2  ;;  %v375_v53 = vpack.c.bf16 %v367_v35, %v367_v35 }
 0x1ad   :  { %v321_v27 = vadd.f32 %v320_v17, %v319_v8  ;;  %v360_v31 = vrot.slane %v359_v21, 2  ;;  %v355_v38 = vrot.slane %v354_v18, 1  ;;  %v373_v44 = vpack.c.bf16 %v365_v26, %v365_v26 }
 0x1ae   :  { %v340_v30 = vadd.f32 %v339_v20, %v338_v11  ;;  %v345_v43 = vadd.f32 %v344_v32, %v343_v23  ;;  %v368_v51 = vmul.f32 0.125, %v335_v36  ;;  %v391_v2 = vunpack.c.l.b16 %v375_v53  ;;  %v1578_v32 = vld [vmem:[%s2053_s1 + $0x8] sm:$0xff]  }
 0x1af   :  { %v366_v37 = vmul.f32 0.125, %v321_v27  ;;  %v361_v42 = vadd.f32 %v360_v31, %v359_v21  ;;  %v356_v56 = vadd.f32 %v355_v38, %v354_v18  ;;  %v389_v59 = vunpack.c.l.b16 %v373_v44 }
 0x1b0   :  { %v341_v41 = vrot.slane %v340_v30, 1  ;;  %v346_v50 = vrot.slane %v345_v43, 2  ;;  %v376_v61 = vpack.c.bf16 %v368_v51, %v368_v51  ;;  %v467_v35 = vpack.c.bf16 %v300_v39, %v299_v28  ;;  %v1581_v28 = vld [vmem:[%s2053_s1 + $0x20] sm:$0xff]  }
 0x1b1   :  { %v374_v45 = vpack.c.bf16 %v366_v37, %v366_v37  ;;  %v362_v49 = vrot.slane %v361_v42, 1  ;;  %v371_v3 = vmul.f32 0.125, %v356_v56  ;;  %v468_v36 = vpack.c.bf16 %v302_v33, %v301_v24  ;;  %v1580_v24 = vld [vmem:[%s2053_s1 + $0x28] sm:$0xff]  }
 0x1b2   :  { %v342_v48 = vadd.f32 %v341_v41, %v340_v30  ;;  %v347_v58 = vadd.f32 %v346_v50, %v345_v43  ;;  %v392_v8 = vunpack.c.l.b16 %v376_v61  ;;  %v469_v25 = vpack.c.bf16 %v304_v14, %v303_v54  ;;  %1518 = vmatprep.subr.bf16.mxu1 %v1580_v24 }
 0x1b3   :  { %v390_v52 = vunpack.c.l.b16 %v374_v45  ;;  %v363_v60 = vadd.f32 %v362_v49, %v361_v42  ;;  %v379_v11 = vpack.c.bf16 %v371_v3, %v371_v3  ;;  %1519 = vmatpush3.bf16.msra.mxu1 %v1580_v24  ;;  %v1648_v33 = vmov 1966171168   ;;  %v1388_v49 = vld [vmem:[%s2055_s3 + $0x1] ss:$0 sm:$0xff] }
 0x1b4   :  { %v369_v57 = vmul.f32 0.125, %v342_v48  ;;  %v348_v1 = vrot.slane %v347_v58, 1  ;;  %1520 = vmatprep.subr.bf16.mxu1 %v1581_v28  ;;  %v567_v34 = vunpack.c.l.s4 %v1648_v33  ;;  %v569_v39 = vlaneseq }
 0x1b5   :  { %v398_v0 = vsel %vm397_vm3, %v390_v52, %v389_v59  ;;  %v372_v5 = vmul.f32 0.125, %v363_v60  ;;  %v395_v20 = vunpack.c.l.b16 %v379_v11 }
 0x1b6   :  { %v377_v4 = vpack.c.bf16 %v369_v57, %v369_v57  ;;  %v349_v6 = vadd.f32 %v348_v1, %v347_v58  ;;  %v400_v7 = vsel %vm399_vm4, %v391_v2, %v398_v0  ;;  %v568_v40 = vunpack.c.0.s8 %v567_v34 }
 0x1b7   :  { %v402_v15 = vsel %vm401_vm5, %v392_v8, %v400_v7  ;;  %v380_v16 = vpack.c.bf16 %v372_v5, %v372_v5  ;;  %1521 = vmatpush3.bf16.msra.mxu1 %v1581_v28 }
 0x1b8   :  { %v370_v9 = vmul.f32 0.125, %v349_v6  ;;  %v393_v13 = vunpack.c.l.b16 %v377_v4  ;;  %1522 = vmatprep.subr.bf16.mxu1 %v1582_v29 }
 0x1b9   :  { %v396_v23 = vunpack.c.l.b16 %v380_v16 }
 0x1ba   :  { %v378_v17 = vpack.c.bf16 %v370_v9, %v370_v9  ;;  %v404_v21 = vsel %vm403_vm6, %v393_v13, %v402_v15 }
 0x1bb   :  { %1523 = vmatpush3.bf16.msra.mxu1 %v1582_v29 }
 0x1bc   :  { %v394_v18 = vunpack.c.l.b16 %v378_v17  ;;  %1544 = vmatprep.subr.bf16.mxu1 %v1646_v10 }
 0x1be   :  { %v406_v26 = vsel %vm405_vm9, %v394_v18, %v404_v21 }
 0x1bf   :  { %v408_v27 = vsel %vm407_vm10, %v395_v20, %v406_v26 }
 0x1c0   :  { %v410_v30 = vsel %vm409_vm11, %v396_v23, %v408_v27 }
 0x1c1   :  { %v411_v31 = vpack.c.b16 %v410_v30, %v410_v30 }
 0x1c3   :  { %1501 = vmatmul.mubr.msk.bf16.vlgmr.msra.gmra.mxu0 %vm307_vm12, %v411_v31 }
 0x1c4   :  { %1505 = vmatpush3.bf16.msra.mxu0 %v1755_v12  ;;  %1508 = vmatprep.mubr.msk.bf16.mxu0 %vm307_vm12, %v467_v35  ;;  %v470_v12 = vpack.c.bf16 %v306_v62, %v305_v46  ;;  %v1864_v46 = vshrl.u32 %v569_v39, 7 }
 0x1c5   :  { %1506 = vmatprep.subr.bf16.mxu0 %v1578_v32 }
 0x1c6   :  { %v571_v47 = vsub.s32 %v568_v40, %v1864_v46  ;;  %v1868_v48 = vsub.s32 0, %v1864_v46 }
 0x1c8   :  { %1507 = vmatpush3.bf16.msra.mxu0 %v1578_v32 }
 0x1c9   :  { %1532 = vmatprep.subr.bf16.mxu0 %v1646_v10 }
 0x1cb   :  { %1509 = vmatmul.mubr.msk.bf16.vlgmr.msra.gmra.mxu0 %vm307_vm12, %v468_v36 }
 0x1cc   :  { %1512 = vmatprep.mubr.msk.bf16.mxu0 %vm307_vm12, %v469_v25 }
 0x1d3   :  { %1513 = vmatmul.mubr.msk.bf16.gmra.mxu0 %vm307_vm12, %v470_v12 }
 0x1d4   :  { %1540 = vmatprep.mubr.msk.bf16.mxu0 %vm1647_vm8, %v1646_v10 }
 0x283   :  { %v461_v54 = vpop.f32.mrf.mxu0 }
 0x284   :  { %v565_v55 = vcombine.high %v461_v54, %v461_v54  ;;  %v572_v62 = vrot.slane %v461_v54, %v571_v47 }
 0x285   :  { %v1502_v63 = vpop.f32.mrf.mxu0 }
 0x286   :  { %v580_v14 = vcombine.high %v572_v62, %v572_v62  ;;  %v579_v38 = vrot.slane %v565_v55, %v571_v47  ;;  %v588_v42 = vrot.slane %v572_v62, %v571_v47  ;;  %v1395_v63 = vld [vmem:[%s2055_s3 + $0x2] ss:$0 sm:$0xff] }
 0x287   :  { %v464_v37 = vpop.f32.mrf.mxu0 }
 0x288   :  { %v602_v41 = vrot.slane %v580_v14, %v571_v47  ;;  %v581_v45 = vcombine.high %v579_v38, %v579_v38  ;;  %v610_v51 = vcombine.high %v588_v42, %v588_v42  ;;  %v617_v59 = vrot.slane %v588_v42, %v1868_v48 }
 0x289   :  { %v1503_v43 = vpop.f32.mrf.mxu0  ;;  %v595_v0 = vrot.slane %v579_v38, %v571_v47 }
 0x28a   :  { %v612_v50 = vcombine.high %v602_v41, %v602_v41  ;;  %v609_v58 = vrot.slane %v581_v45, %v571_v47  ;;  %v625_v1 = vrot.slane %v610_v51, %v1868_v48  ;;  %v621_v6 = vrot.slane %v602_v41, %v1868_v48  ;;  %v1404_v41 = vld [vmem:[%s2055_s3 + $0x4] ss:$0 sm:$0xff] }
 0x28b   :  { %v1510_v44 = vpop.f32.mrf.mxu0  ;;  %v611_v15 = vcombine.high %v595_v0, %v595_v0  ;;  %v633_v30 = vrot.slane %v595_v0, %v1868_v48 }
 0x28c   :  { %v542_v56 = vadd.f32 %v1510_v44, %v1388_v49  ;;  %v629_v61 = vrot.slane %v612_v50, %v1868_v48  ;;  %v613_v11 = vcombine.high %v609_v58, %v609_v58  ;;  %v637_v28 = vrot.slane %v609_v58, %v1868_v48 }
 0x28d   :  { %v533_v52 = vpop.f32.mrf.mxu0  ;;  %v641_v36 = vrot.slane %v611_v15, %v1868_v48 }
 0x28e   :  { %v534_v53 = vadd.f32 %v1388_v49, %v533_v52  ;;  %v656_v7 = vadd.f32 %v625_v1, %v542_v56  ;;  %v645_v32 = vrot.slane %v613_v11, %v1868_v48 }
 0x28f   :  { %v1511_v57 = vpop.f32.mrf.mxu0 }
 0x290   :  { %v545_v60 = vadd.f32 %v1511_v57, %v1388_v49  ;;  %v654_v3 = vadd.f32 %v617_v59, %v534_v53  ;;  %v664_v21 = vmax.f32 %v656_v7, 0.0 }
 0x291   :  { %v536_v2 = vpop.f32.mrf.mxu0 }
 0x292   :  { %v657_v4 = vadd.f32 %v629_v61, %v545_v60  ;;  %v537_v5 = vadd.f32 %v1388_v49, %v536_v2  ;;  %v662_v17 = vmax.f32 %v654_v3, 0.0 }
 0x293   :  { %v1514_v8 = vpop.f32.mrf.mxu0 }
 0x294   :  { %v655_v9 = vadd.f32 %v621_v6, %v537_v5  ;;  %v665_v13 = vmax.f32 %v657_v4, 0.0  ;;  %v558_v23 = vadd.f32 %v1514_v8, %v1388_v49 }
 0x295   :  { %v549_v16 = vpop.f32.mrf.mxu0 }
 0x296   :  { %v663_v18 = vmax.f32 %v655_v9, 0.0  ;;  %v550_v20 = vadd.f32 %v1388_v49, %v549_v16  ;;  %v671_v35 = vpack.c.bf16 %v665_v13, %v664_v21  ;;  %v660_v29 = vadd.f32 %v641_v36, %v558_v23 }
 0x297   :  { %v1515_v26 = vpop.f32.mrf.mxu0 }
 0x298   :  { %v670_v27 = vpack.c.bf16 %v663_v18, %v662_v17  ;;  %v561_v31 = vadd.f32 %v1515_v26, %v1388_v49  ;;  %v658_v12 = vadd.f32 %v633_v30, %v550_v20  ;;  %v668_v54 = vmax.f32 %v660_v29, 0.0 }
 0x299   :  { %v552_v25 = vpop.f32.mrf.mxu0 }
 0x29a   :  { %v661_v22 = vadd.f32 %v645_v32, %v561_v31  ;;  %v553_v24 = vadd.f32 %v1388_v49, %v552_v25  ;;  %1524 = vmatprep.mubr.msk.bf16.mxu1 %vm221_vm7, %v670_v27  ;;  %v666_v40 = vmax.f32 %v658_v12, 0.0  ;;  %v1649_v31 = vmov 0   ;;  %v1405_v32 = vld [vmem:[%s2056_s4 + $0x3] ss:$0 sm:$0xff] }
 0x29b   :  { %1525 = vmatmul.mubr.msk.bf16.vlgmr.msra.gmra.mxu1 %vm221_vm7, %v671_v35  ;;  %1569 = vset.pattern.permute.xlu1 %v1649_v31 }
 0x29c   :  { %v659_v33 = vadd.f32 %v637_v28, %v553_v24  ;;  %v669_v34 = vmax.f32 %v661_v22, 0.0  ;;  %1568 = vset.pattern.permute.xlu0 %v1649_v31 }
 0x29e   :  { %v667_v47 = vmax.f32 %v659_v33, 0.0  ;;  %v673_v62 = vpack.c.bf16 %v669_v34, %v668_v54 }
 0x2a0   :  { %v672_v55 = vpack.c.bf16 %v667_v47, %v666_v40 }
 0x2a2   :  { %1528 = vmatprep.mubr.msk.bf16.mxu1 %vm221_vm7, %v672_v55 }
 0x2a3   :  { %1529 = vmatmul.mubr.msk.bf16.gmra.mxu1 %vm221_vm7, %v673_v62 }
 0x2a4   :  { %1546 = vmatprep.mubr.msk.bf16.mxu1 %vm1647_vm8, %v1646_v10 }
 0x35b   :  { %v1526_v14 = vpop.f32.mrf.mxu1 }
 0x35c   :  { %v1890_v37 = vadd.f32 %v1526_v14, %v1395_v63 }
 0x35d   :  { %v748_v38 = vpop.f32.mrf.mxu1 }
 0x35e   :  { %v781_v42 = vmax.f32 %v1890_v37, 0.0  ;;  %v1896_v43 = vadd.f32 %v1395_v63, %v748_v38 }
 0x35f   :  { %v1527_v44 = vpop.f32.mrf.mxu1 }
 0x360   :  { %v779_v45 = vmax.f32 %v1896_v43, 0.0  ;;  %v1899_v49 = vadd.f32 %v1527_v44, %v1395_v63  ;;  %v793_v50 = vmul.f32 %v1404_v41, %v781_v42 }
 0x361   :  { %v751_v51 = vpop.f32.mrf.mxu1 }
 0x362   :  { %v782_v52 = vmax.f32 %v1899_v49, 0.0  ;;  %v1902_v53 = vadd.f32 %v1395_v63, %v751_v51  ;;  %v805_v56 = vsel %vm221_vm7, %v793_v50, 0.0  ;;  %v791_v57 = vmul.f32 %v1404_v41, %v779_v45 }
 0x363   :  { %806 = vadd.xlane.f32.xlu1 %v805_v56  ;;  %v1530_v58 = vpop.f32.mrf.mxu1 }
 0x364   :  { %v780_v59 = vmax.f32 %v1902_v53, 0.0  ;;  %v1906_v60 = vadd.f32 %v1530_v58, %v1395_v63  ;;  %v799_v61 = vsel %vm221_vm7, %v791_v57, 0.0  ;;  %v794_v0 = vmul.f32 %v1404_v41, %v782_v52 }
 0x365   :  { %v764_v1 = vpop.f32.mrf.mxu1  ;;  %800 = vadd.xlane.f32.xlu0 %v799_v61 }
 0x366   :  { %v1909_v2 = vadd.f32 %v1395_v63, %v764_v1  ;;  %v808_v3 = vsel %vm221_vm7, %v794_v0, 0.0  ;;  %v792_v4 = vmul.f32 %v1404_v41, %v780_v59  ;;  %v785_v6 = vmax.f32 %v1906_v60, 0.0 }
 0x367   :  { %809 = vadd.xlane.f32.xlu1 %v808_v3  ;;  %v1531_v5 = vpop.f32.mrf.mxu1 }
 0x368   :  { %v783_v7 = vmax.f32 %v1909_v2, 0.0  ;;  %v1914_v8 = vadd.f32 %v1531_v5, %v1395_v63  ;;  %v802_v9 = vsel %vm221_vm7, %v792_v4, 0.0  ;;  %v797_v20 = vmul.f32 %v1404_v41, %v785_v6 }
 0x369   :  { %v767_v11 = vpop.f32.mrf.mxu1  ;;  %803 = vadd.xlane.f32.xlu0 %v802_v9 }
 0x36a   :  { %v1917_v13 = vadd.f32 %v1395_v63, %v767_v11  ;;  %v795_v15 = vmul.f32 %v1404_v41, %v783_v7  ;;  %v786_v16 = vmax.f32 %v1914_v8, 0.0  ;;  %v817_v26 = vsel %vm221_vm7, %v797_v20, 0.0 }
 0x36c   :  { %v784_v17 = vmax.f32 %v1917_v13, 0.0  ;;  %v811_v18 = vsel %vm221_vm7, %v795_v15, 0.0  ;;  %v798_v27 = vmul.f32 %v1404_v41, %v786_v16 }
 0x36d   :  { %812 = vadd.xlane.f32.xlu0 %v811_v18 }
 0x36e   :  { %v796_v21 = vmul.f32 %v1404_v41, %v784_v17  ;;  %v820_v30 = vsel %vm221_vm7, %v798_v27, 0.0 }
 0x370   :  { %v814_v23 = vsel %vm221_vm7, %v796_v21, 0.0 }
 0x371   :  { %815 = vadd.xlane.f32.xlu1 %v814_v23  ;;  %818 = vadd.xlane.f32.xlu0 %v817_v26 }
 0x375   :  { %821 = vadd.xlane.f32.xlu1 %v820_v30 }
 0x3ec   :  { %v807_v35 = vpop.xlane.xlu1 %806 }
 0x3ed   :  { %v829_v36 = vadd.f32 %v1405_v32, %v807_v35 }
 0x3ee   :  { %v801_v25 = vpop.xlane.xlu0 %800 }
 0x3ef   :  { %v839_v12 = vmul.f32 1.442695, %v829_v36  ;;  %v827_v22 = vadd.f32 %v1405_v32, %v801_v25  ;;  %vm853_vm13 = vcmp.ne.f32.partialorder %v829_v36, 0.0 }
 0x3f0   :  { %v810_v24 = vpop.xlane.xlu1 %809  ;;  %v1408_v50 = vsel %vm853_vm13, 1.0, %v1646_v10 }
 0x3f1   :  { %1591 = vpow2.f32 %v839_v12  ;;  %v835_v28 = vmul.f32 1.442695, %v827_v22  ;;  %v830_v29 = vadd.f32 %v1405_v32, %v810_v24  ;;  %vm851_vm14 = vcmp.ne.f32.partialorder %v827_v22, 0.0 }
 0x3f2   :  { %v804_v33 = vpop.xlane.xlu0 %803  ;;  %v1406_v58 = vsel %vm851_vm14, 1.0, %v1646_v10 }
 0x3f3   :  { %1593 = vpow2.f32 %v835_v28  ;;  %v841_v34 = vmul.f32 1.442695, %v830_v29  ;;  %v828_v40 = vadd.f32 %v1405_v32, %v804_v33  ;;  %vm854_vm0 = vcmp.ne.f32.partialorder %v830_v29, 0.0 }
 0x3f4   :  { %v1409_v4 = vsel %vm854_vm0, 1.0, %v1646_v10 }
 0x3f5   :  { %1595 = vpow2.f32 %v841_v34  ;;  %v837_v47 = vmul.f32 1.442695, %v828_v40  ;;  %vm852_vm1 = vcmp.ne.f32.partialorder %v828_v40, 0.0 }
 0x3f6   :  { %v813_v54 = vpop.xlane.xlu0 %812  ;;  %v1407_v15 = vsel %vm852_vm1, 1.0, %v1646_v10  ;;  %vm1198_vm1 = vcmask 48128  }
 0x3f7   :  { %1597 = vpow2.f32 %v837_v47  ;;  %v831_v55 = vadd.f32 %v1405_v32, %v813_v54 }
 0x3f9   :  { %v843_v62 = vmul.f32 1.442695, %v831_v55  ;;  %vm855_vm2 = vcmp.ne.f32.partialorder %v831_v55, 0.0 }
 0x3fa   :  { %v816_v63 = vpop.xlane.xlu1 %815  ;;  %v819_v14 = vpop.xlane.xlu0 %818  ;;  %v1410_v26 = vsel %vm855_vm2, 1.0, %v1646_v10 }
 0x3fb   :  { %1599 = vpow2.f32 %v843_v62  ;;  %v832_v38 = vadd.f32 %v1405_v32, %v816_v63  ;;  %v833_v41 = vadd.f32 %v1405_v32, %v819_v14 }
 0x3fd   :  { %v845_v42 = vmul.f32 1.442695, %v832_v38  ;;  %v847_v44 = vmul.f32 1.442695, %v833_v41  ;;  %vm856_vm13 = vcmp.ne.f32.partialorder %v832_v38, 0.0  ;;  %vm857_vm14 = vcmp.ne.f32.partialorder %v833_v41, 0.0 }
 0x3fe   :  { %v1592_v45 = vpop.eup %1591  ;;  %v822_v51 = vpop.xlane.xlu1 %821  ;;  %v1411_v29 = vsel %vm856_vm13, 1.0, %v1646_v10  ;;  %v1412_v14 = vsel %vm857_vm14, 1.0, %v1646_v10 }
 0x3ff   :  { %v1929_v52 = vmul.f32 %v1592_v45, %v1408_v50  ;;  %1601 = vpow2.f32 %v845_v42  ;;  %v834_v56 = vadd.f32 %v1405_v32, %v822_v51 }
 0x400   :  { %v1594_v57 = vpop.eup %1593  ;;  %1603 = vpow2.f32 %v847_v44 }
 0x401   :  { %v898_v59 = vsel %vm883_vm15, %v1929_v52, 0.0  ;;  %v1934_v61 = vmul.f32 %v1594_v57, %v1406_v58  ;;  %v849_v0 = vmul.f32 1.442695, %v834_v56  ;;  %vm858_vm0 = vcmp.ne.f32.partialorder %v834_v56, 0.0 }
 0x402   :  { %v1596_v1 = vpop.eup %1595  ;;  %v899_v3 = vrot.slane %v898_v59, 4  ;;  %v1413_v57 = vsel %vm858_vm0, 1.0, %v1646_v10 }
 0x403   :  { %v884_v5 = vsel %vm883_vm15, %v1934_v61, 0.0  ;;  %v1939_v6 = vmul.f32 %v1596_v1, %v1409_v4  ;;  %1605 = vpow2.f32 %v849_v0 }
 0x404   :  { %v1598_v7 = vpop.eup %1597  ;;  %v900_v9 = vadd.f32 %v899_v3, %v898_v59  ;;  %v885_v11 = vrot.slane %v884_v5, 4 }
 0x405   :  { %v905_v16 = vsel %vm883_vm15, %v1939_v6, 0.0  ;;  %v1944_v17 = vmul.f32 %v1598_v7, %v1407_v15 }
 0x406   :  { %v901_v18 = vrot.slane %v900_v9, 2  ;;  %v886_v20 = vadd.f32 %v885_v11, %v884_v5  ;;  %v906_v21 = vrot.slane %v905_v16, 4 }
 0x407   :  { %v891_v23 = vsel %vm883_vm15, %v1944_v17, 0.0 }
 0x408   :  { %v1600_v27 = vpop.eup %1599  ;;  %v902_v30 = vadd.f32 %v901_v18, %v900_v9  ;;  %v887_v31 = vrot.slane %v886_v20, 2  ;;  %v907_v32 = vadd.f32 %v906_v21, %v905_v16  ;;  %v892_v35 = vrot.slane %v891_v23, 4 }
 0x409   :  { %v1949_v36 = vmul.f32 %v1600_v27, %v1410_v26 }
 0x40a   :  { %v903_v25 = vrot.slane %v902_v30, 1  ;;  %v888_v12 = vadd.f32 %v887_v31, %v886_v20  ;;  %v908_v22 = vrot.slane %v907_v32, 2  ;;  %v893_v24 = vadd.f32 %v892_v35, %v891_v23 }
 0x40b   :  { %v912_v28 = vsel %vm883_vm15, %v1949_v36, 0.0 }
 0x40c   :  { %v1602_v33 = vpop.eup %1601  ;;  %v904_v34 = vadd.f32 %v903_v25, %v902_v30  ;;  %v889_v40 = vrot.slane %v888_v12, 1  ;;  %v909_v47 = vadd.f32 %v908_v22, %v907_v32  ;;  %v894_v54 = vrot.slane %v893_v24, 2 }
 0x40d   :  { %v1604_v55 = vpop.eup %1603  ;;  %v913_v62 = vrot.slane %v912_v28, 4  ;;  %v1954_v63 = vmul.f32 %v1602_v33, %v1411_v29 }
 0x40e   :  { %1607 = vrcp.f32 %v904_v34  ;;  %v890_v38 = vadd.f32 %v889_v40, %v888_v12  ;;  %v910_v42 = vrot.slane %v909_v47, 1  ;;  %v895_v44 = vadd.f32 %v894_v54, %v893_v24 }
 0x40f   :  { %v914_v45 = vadd.f32 %v913_v62, %v912_v28  ;;  %v919_v50 = vsel %vm883_vm15, %v1954_v63, 0.0  ;;  %v881_v51 = vmul.f32 %v1604_v55, %v1412_v14  ;;  %v82_v55 = vld [vmem:[%s2056_s4 + $0x4] sm:$0x1] }
 0x410   :  { %v1606_v58 = vpop.eup %1605  ;;  %1609 = vrcp.f32 %v890_v38  ;;  %v911_v59 = vadd.f32 %v910_v42, %v909_v47  ;;  %v896_v0 = vrot.slane %v895_v44, 1  ;;  %v920_v1 = vrot.slane %v919_v50, 4 }
 0x411   :  { %v915_v3 = vrot.slane %v914_v45, 2  ;;  %v926_v41 = vsel %vm883_vm15, %v881_v51, 0.0  ;;  %v882_v4 = vmul.f32 %v1606_v58, %v1413_v57  ;;  %v1585_v58 = vld [vmem:[%s2053_s1 + $0x58] sm:$0xff]  }
 0x412   :  { %1611 = vrcp.f32 %v911_v59  ;;  %v897_v5 = vadd.f32 %v896_v0, %v895_v44  ;;  %v921_v7 = vadd.f32 %v920_v1, %v919_v50  ;;  %v927_v9 = vrot.slane %v926_v41, 4  ;;  %v1586_v59 = vld [vmem:[%s2053_s1 + $0x50] sm:$0xff]  }
 0x413   :  { %v916_v11 = vadd.f32 %v915_v3, %v914_v45  ;;  %v933_v15 = vsel %vm883_vm15, %v882_v4, 0.0  ;;  %vm1202_vm15 = vcmask 1042432  }
 0x414   :  { %1613 = vrcp.f32 %v897_v5  ;;  %v922_v16 = vrot.slane %v921_v7, 2  ;;  %v928_v56 = vadd.f32 %v927_v9, %v926_v41  ;;  %v934_v18 = vrot.slane %v933_v15, 4 }
 0x415   :  { %v917_v23 = vrot.slane %v916_v11, 1 }
 0x416   :  { %v929_v20 = vrot.slane %v928_v56, 2  ;;  %v935_v21 = vadd.f32 %v934_v18, %v933_v15  ;;  %v923_v26 = vadd.f32 %v922_v16, %v921_v7 }
 0x417   :  { %v918_v35 = vadd.f32 %v917_v23, %v916_v11 }
 0x418   :  { %v930_v27 = vadd.f32 %v929_v20, %v928_v56  ;;  %v936_v30 = vrot.slane %v935_v21, 2  ;;  %v924_v25 = vrot.slane %v923_v26, 1 }
 0x41a   :  { %v931_v31 = vrot.slane %v930_v27, 1  ;;  %v937_v22 = vadd.f32 %v936_v30, %v935_v21  ;;  %v925_v34 = vadd.f32 %v924_v25, %v923_v26 }
 0x41b   :  { %v1608_v32 = vpop.eup %1607 }
 0x41c   :  { %v932_v12 = vadd.f32 %v931_v31, %v930_v27  ;;  %v945_v24 = vmul.f32 %v1608_v32, %v1929_v52  ;;  %v938_v40 = vrot.slane %v937_v22, 1 }
 0x41d   :  { %v1610_v28 = vpop.eup %1609 }
 0x41e   :  { %1615 = vrcp.f32 %v932_v12  ;;  %968 = vperm.xlu1 %1569, %v945_v24   ;;  %v941_v29 = vmul.f32 %v1610_v28, %v1934_v61  ;;  %v939_v52 = vadd.f32 %v938_v40, %v937_v22 }
 0x41f   :  { %v1612_v33 = vpop.eup %1611  ;;  %1617 = vrcp.f32 %v918_v35 }
 0x420   :  { %958 = vperm.xlu0 %1568, %v941_v29   ;;  %v947_v47 = vmul.f32 %v1612_v33, %v1939_v6  ;;  %1619 = vrcp.f32 %v925_v34 }
 0x421   :  { %v1614_v54 = vpop.eup %1613  ;;  %1621 = vrcp.f32 %v939_v52 }
 0x422   :  { %973 = vperm.xlu1 %1569, %v947_v47   ;;  %v943_v62 = vmul.f32 %v1614_v54, %v1944_v17  ;;  %v1583_v17 = vld [vmem:[%s2053_s1 + $0x68] sm:$0xff]  }
 0x423   :  { %1533 = vmatpush3.bf16.msra.mxu0 %v1583_v17 }
 0x424   :  { %1335 = vperm.xlu0 %1568, %v82_v55   ;;  %1534 = vmatprep.subr.bf16.mxu0 %v1646_v10 }
 0x426   :  { %963 = vperm.xlu1 %1569, %v943_v62  }
 0x42b   :  { %v1616_v61 = vpop.eup %1615 }
 0x42c   :  { %v953_v14 = vmul.f32 %v1616_v61, %v881_v51  ;;  %v1618_v38 = vpop.eup %1617  ;;  %v1584_v51 = vld [vmem:[%s2053_s1 + $0x60] sm:$0xff]  }
 0x42d   :  { %v949_v42 = vmul.f32 %v1618_v38, %v1949_v36  ;;  %v1620_v6 = vpop.eup %1619  ;;  %v48_v36 = vld [vmem:[%s2053_s1 + $0x48] sm:$0x7]  ;;  %1535 = vmatpush3.bf16.msra.mxu0 %v1584_v51 }
 0x42e   :  { %988 = vperm.xlu1 %1569, %v953_v14   ;;  %v951_v44 = vmul.f32 %v1620_v6, %v1954_v63  ;;  %v1622_v45 = vpop.eup %1621  ;;  %v1197_v63 = vpack.c.b16 %v1762_v19, %v1762_v19  ;;  %v1204_v57 = vsel %vm1202_vm15, %v48_v36, 0  ;;  %1536 = vmatprep.subr.bf16.mxu0 %v1646_v10 }
 0x42f   :  { %v955_v50 = vmul.f32 %v1622_v45, %v882_v4  ;;  %1545 = vmatpush3.bf16.msra.mxu1 %v1204_v57 }
 0x431   :  { %1537 = vmatpush3.bf16.msra.mxu0 %v1585_v58 }
 0x432   :  { %978 = vperm.xlu1 %1569, %v949_v42   ;;  %1547 = vmatmul.mubr.msk.bf16.vlgmr.msra.gmra.mxu1 %vm1198_vm1, %v1197_v63 }
 0x433   :  { %1538 = vmatprep.subr.bf16.mxu0 %v1646_v10 }
 0x435   :  { %1539 = vmatpush3.bf16.msra.mxu0 %v1586_v59 }
 0x436   :  { %983 = vperm.xlu1 %1569, %v951_v44   ;;  %1550 = vmatprep.subr.bf16.mxu0 %v1646_v10 }
 0x43a   :  { %993 = vperm.xlu1 %1569, %v955_v50  }
 0x499   :  { %v969_v19 = vpop.permute.xlu1 %968 }
 0x49a   :  { %v998_v0 = vmul.f32 %v969_v19, %v1890_v37 }
 0x49b   :  { %v959_v1 = vpop.permute.xlu0 %958 }
 0x49c   :  { %v996_v3 = vmul.f32 %v959_v1, %v1896_v43  ;;  %v1018_v7 = vsel %vm221_vm7, %v998_v0, 0.0 }
 0x49d   :  { %v974_v41 = vpop.permute.xlu1 %973  ;;  %v1019_v16 = vrot.slane %v1018_v7, 4 }
 0x49e   :  { %v1004_v4 = vsel %vm221_vm7, %v996_v3, 0.0  ;;  %v999_v5 = vmul.f32 %v974_v41, %v1899_v49 }
 0x49f   :  { %v1005_v9 = vrot.slane %v1004_v4, 4  ;;  %v1020_v43 = vadd.f32 %v1019_v16, %v1018_v7 }
 0x4a0   :  { %v1025_v11 = vsel %vm221_vm7, %v999_v5, 0.0 }
 0x4a1   :  { %v964_v15 = vpop.permute.xlu1 %963  ;;  %v1006_v18 = vadd.f32 %v1005_v9, %v1004_v4  ;;  %v1026_v20 = vrot.slane %v1025_v11, 4  ;;  %v1021_v31 = vrot.slane %v1020_v43, 2 }
 0x4a2   :  { %v997_v56 = vmul.f32 %v964_v15, %v1902_v53 }
 0x4a3   :  { %v1007_v23 = vrot.slane %v1006_v18, 2  ;;  %v1027_v27 = vadd.f32 %v1026_v20, %v1025_v11  ;;  %v1022_v29 = vadd.f32 %v1021_v31, %v1020_v43 }
 0x4a4   :  { %v1011_v37 = vsel %vm221_vm7, %v997_v56, 0.0 }
 0x4a5   :  { %v1012_v21 = vrot.slane %v1011_v37, 4  ;;  %v1008_v35 = vadd.f32 %v1007_v23, %v1006_v18  ;;  %v1028_v12 = vrot.slane %v1027_v27, 2 }
 0x4a7   :  { %v1013_v26 = vadd.f32 %v1012_v21, %v1011_v37  ;;  %v1009_v34 = vrot.slane %v1008_v35, 1  ;;  %v1029_v47 = vadd.f32 %v1028_v12, %v1027_v27 }
 0x4a9   :  { %v1014_v30 = vrot.slane %v1013_v26, 2  ;;  %v989_v49 = vpop.permute.xlu1 %988  ;;  %v1010_v38 = vadd.f32 %v1009_v34, %v1008_v35  ;;  %v1030_v6 = vrot.slane %v1029_v47, 1 }
 0x4aa   :  { %v1002_v32 = vmul.f32 %v989_v49, %v1906_v60  ;;  %v1023_v60 = vrot.slane %v1022_v29, 1 }
 0x4ab   :  { %v1015_v25 = vadd.f32 %v1014_v30, %v1013_v26  ;;  %v1068_v57 = vpack.c.bf16 %v1010_v38, %v1010_v38  ;;  %v1031_v19 = vadd.f32 %v1030_v6, %v1029_v47  ;;  %v1420_v38 = vld [vmem:[%s2055_s3 + $0x3] ss:$0 sm:$0xff]  ;;  %s1650_s3 = smov [#allocation2]  }
 0x4ac   :  { %v1046_v22 = vsel %vm221_vm7, %v1002_v32, 0.0  ;;  %v1024_v51 = vadd.f32 %v1023_v60, %v1022_v29  ;;  %s1362_s18 = sshll.u32 %s1650_s3, 4  ;;  %s1363_s18 = int_to_ptr.vmem [resolvable:$true] %s1362_s18 }
 0x4ad   :  { %v1016_v53 = vrot.slane %v1015_v25, 1  ;;  %v1047_v24 = vrot.slane %v1046_v22, 4  ;;  %v979_v28 = vpop.permute.xlu1 %978  ;;  %v1084_v7 = vunpack.c.l.b16 %v1068_v57  ;;  %v1071_v16 = vpack.c.bf16 %v1031_v19, %v1031_v19  ;;  %s1627_s19 = scalar_lea.vmem %s1363_s18, 32  ;;  %p1628_p1 = scmp.lt.s32.totalorder %s1363_s18, %s1363_s18 }
 0x4ae   :  { %v1000_v33 = vmul.f32 %v979_v28, %v1909_v2  ;;  %v1070_v4 = vpack.c.bf16 %v1024_v51, %v1024_v51 }
 0x4af   :  { %v1048_v40 = vadd.f32 %v1047_v24, %v1046_v22  ;;  %v1017_v55 = vadd.f32 %v1016_v53, %v1015_v25  ;;  %v1087_v30 = vunpack.c.l.b16 %v1071_v16 }
 0x4b0   :  { %v1032_v54 = vsel %vm221_vm7, %v1000_v33, 0.0  ;;  %v1086_v37 = vunpack.c.l.b16 %v1070_v4 }
 0x4b1   :  { %v1033_v52 = vrot.slane %v1032_v54, 4  ;;  %v984_v62 = vpop.permute.xlu1 %983  ;;  %v1049_v61 = vrot.slane %v1048_v40, 2  ;;  %v1069_v45 = vpack.c.bf16 %v1017_v55, %v1017_v55 }
 0x4b2   :  { %v1001_v14 = vmul.f32 %v984_v62, %v1917_v13 }
 0x4b3   :  { %v1034_v42 = vadd.f32 %v1033_v52, %v1032_v54  ;;  %v1050_v36 = vadd.f32 %v1049_v61, %v1048_v40  ;;  %v1085_v13 = vunpack.c.l.b16 %v1069_v45  ;;  %v1587_v40 = vld [vmem:[%s2054_s2 + $0x38] sm:$0xff]   ;;  %v1588_v54 = vld [vmem:[%s2054_s2 + $0x30] sm:$0xff]   ;;  %v1589_v61 = vld [vmem:[%s2054_s2 + $0x28] sm:$0xff]  }
 0x4b4   :  { %v1039_v44 = vsel %vm221_vm7, %v1001_v14, 0.0  ;;  %v1590_v14 = vld [vmem:[%s2054_s2 + $0x20] sm:$0xff]  }
 0x4b5   :  { %v1035_v50 = vrot.slane %v1034_v42, 2  ;;  %v1040_v2 = vrot.slane %v1039_v44, 4  ;;  %v994_v17 = vpop.permute.xlu1 %993  ;;  %v1051_v5 = vrot.slane %v1050_v36, 1  ;;  %v1092_v56 = vsel %vm397_vm3, %v1085_v13, %v1084_v7 }
 0x4b6   :  { %v1003_v63 = vmul.f32 %v994_v17, %v1914_v8  ;;  %v1093_v26 = vsel %vm399_vm4, %v1086_v37, %v1092_v56  ;;  %v1348_v7 = vand.u32 127, %v569_v39  ;;  %vm1354_vm3 = vcmask 57344  }
 0x4b7   :  { %v1036_v58 = vadd.f32 %v1035_v50, %v1034_v42  ;;  %v1041_v59 = vadd.f32 %v1040_v2, %v1039_v44  ;;  %v1052_v21 = vadd.f32 %v1051_v5, %v1050_v36  ;;  %v1094_v35 = vsel %vm401_vm5, %v1087_v30, %v1093_v26 }
 0x4b8   :  { %v1053_v0 = vsel %vm221_vm7, %v1003_v63, 0.0 }
 0x4b9   :  { %v1037_v1 = vrot.slane %v1036_v58, 1  ;;  %v1042_v3 = vrot.slane %v1041_v59, 2  ;;  %v1054_v41 = vrot.slane %v1053_v0, 4  ;;  %v1074_v32 = vpack.c.bf16 %v1052_v21, %v1052_v21 }
 0x4bb   :  { %v1038_v9 = vadd.f32 %v1037_v1, %v1036_v58  ;;  %v1043_v11 = vadd.f32 %v1042_v3, %v1041_v59  ;;  %v1055_v15 = vadd.f32 %v1054_v41, %v1053_v0  ;;  %v1090_v28 = vunpack.c.l.b16 %v1074_v32  ;;  %v1427_v58 = vld [vmem:[%s2056_s4 + $0x2] ss:$0 sm:$0xff]  ;;  %v1336_v3 = vpop.permute.xlu0 %1335 }
 0x4bc   :  { %v1340_v41 = vrot.slane %v1336_v3, %v1868_v48 }
 0x4bd   :  { %v1072_v8 = vpack.c.bf16 %v1038_v9, %v1038_v9  ;;  %v1044_v18 = vrot.slane %v1043_v11, 1  ;;  %v1056_v20 = vrot.slane %v1055_v15, 2  ;;  %v1351_v9 = vsub.s32 %v1348_v7, %v1864_v46 }
 0x4bf   :  { %v1045_v43 = vadd.f32 %v1044_v18, %v1043_v11  ;;  %v1057_v23 = vadd.f32 %v1056_v20, %v1055_v15  ;;  %v1088_v27 = vunpack.c.l.b16 %v1072_v8 }
 0x4c1   :  { %v1073_v49 = vpack.c.bf16 %v1045_v43, %v1045_v43  ;;  %v1058_v31 = vrot.slane %v1057_v23, 1  ;;  %v1095_v22 = vsel %vm403_vm6, %v1088_v27, %v1094_v35 }
 0x4c3   :  { %v1089_v25 = vunpack.c.l.b16 %v1073_v49  ;;  %v1059_v12 = vadd.f32 %v1058_v31, %v1057_v23 }
 0x4c5   :  { %v1096_v53 = vsel %vm405_vm9, %v1089_v25, %v1095_v22  ;;  %v1075_v24 = vpack.c.bf16 %v1059_v12, %v1059_v12 }
 0x4c6   :  { %v1097_v33 = vsel %vm407_vm10, %v1090_v28, %v1096_v53 }
 0x4c7   :  { %v1091_v29 = vunpack.c.l.b16 %v1075_v24 }
 0x4c9   :  { %v1098_v34 = vsel %vm409_vm11, %v1091_v29, %v1097_v33 }
 0x4ca   :  { %v1099_v47 = vpack.c.b16 %v1098_v34, %v1098_v34 }
 0x4cc   :  { %1541 = vmatmul.mubr.msk.bf16.vlgmr.msra.gmra.mxu0 %vm221_vm7, %v1099_v47 }
 0x4cd   :  { %1551 = vmatpush3.bf16.msra.mxu0 %v1587_v40  ;;  %1558 = vmatprep.mubr.msk.bf16.mxu0 %vm1647_vm8, %v1646_v10 }
 0x4ce   :  { %1552 = vmatprep.subr.bf16.mxu0 %v1646_v10 }
 0x4d1   :  { %1553 = vmatpush3.bf16.msra.mxu0 %v1588_v54 }
 0x4d2   :  { %1554 = vmatprep.subr.bf16.mxu0 %v1646_v10 }
 0x4d5   :  { %1555 = vmatpush3.bf16.msra.mxu0 %v1589_v61 }
 0x4d6   :  { %1556 = vmatprep.subr.bf16.mxu0 %v1646_v10  ;;  %v1421_v10 = vld [vmem:[%s2056_s4 + $0x1] ss:$0 sm:$0xff]  ;;  %s1623_s4 = scalar_lea.vmem %s1363_s18, 16 }
 0x4d7   :  { %p1624_p0 = scmp.ne.s32.totalorder %s1363_s18, %s1623_s4  ;;  %p1629_p2 = scmp.lt.s32.totalorder %s1627_s19, %s1623_s4 }
 0x4d9   :  { %1557 = vmatpush3.bf16.msra.mxu0 %v1590_v14  ;;  %p1630_p3 = por %p1629_p2, %p1628_p1 }
 0x4db   :  { %p1631_p4 = pnand %p1630_p3, %p1624_p0 }
 0x4f2   :  { %v1240_v55 = vpop.f32.mrf.mxu1 }
 0x4f4   :  { %v1548_v52 = vpop.f32.mrf.mxu1 }
 0x4f6   :  { %v1243_v62 = vpop.f32.mrf.mxu1 }
 0x4f8   :  { %v1549_v60 = vpop.f32.mrf.mxu1 }
 0x58c   :  { %v1161_v42 = vpop.f32.mrf.mxu0 }
 0x58d   :  { %v1241_v6 = vadd.f32 %v1240_v55, %v1161_v42 }
 0x58e   :  { %v1542_v44 = vpop.f32.mrf.mxu0 }
 0x58f   :  { %v1250_v45 = vadd.f32 %v1420_v38, %v1241_v6 }
 0x590   :  { %v1164_v50 = vpop.f32.mrf.mxu0 }
 0x591   :  { %v1251_v2 = vmax.f32 %v1250_v45, 0.0 }
 0x592   :  { %v1543_v17 = vpop.f32.mrf.mxu0 }
 0x593   :  { %v1252_v51 = vpack.c.bf16 %v1251_v2, %v1251_v2 }
 0x595   :  { %1559 = vmatmul.mubr.msk.bf16.vlgmr.msra.gmra.mxu0 %vm221_vm7, %v1252_v51 }
 0x655   :  { %v1318_v36 = vpop.f32.mrf.mxu0 }
 0x656   :  { %v1319_v63 = vadd.f32 %v1421_v10, %v1318_v36 }
 0x657   :  { %v1560_v57 = vpop.f32.mrf.mxu0 }
 0x658   :  { %v1324_v59 = vmax.f32 %v1319_v63, 0.0 }
 0x659   :  { %v1321_v19 = vpop.f32.mrf.mxu0 }
 0x65a   :  { %v1329_v0 = vmul.f32 %v1427_v58, %v1324_v59 }
 0x65b   :  { %v1561_v13 = vpop.f32.mrf.mxu0 }
 0x65c   :  { %v1330_v1 = vsel %vm307_vm12, %v1329_v0, 0.0 }
 0x65d   :  { %1331 = vadd.xlane.f32.xlu1 %v1330_v1 }
 0x6e6   :  { %v1332_v4 = vpop.xlane.xlu1 %1331 }
 0x6e7   :  { %v1342_v5 = vadd.f32 %v1340_v41, %v1332_v4 }
 0x6e9   :  { %1345 = vperm.xlu0 %1568, %v1342_v5  }
 0x764   :  { %v1346_v11 = vpop.permute.xlu0 %1345 }
 0x765   :  { %v1352_v15 = vrot.slane %v1346_v11, %v1351_v9 }
 0x767   :  { %1355 = vst.msk [vmem:[#allocation2] sm:$0x1] %vm1354_vm3, %v1352_v15 }
 0x768   :  { %1634 = shalt.err (!%p1631_p4)
}
 0x769   :  { %1365 = dma.vmem_to_hbm [thread:$0]  %s1363_s18, 16, %s2057_s5, [#allocation3]  }
 0x76a   :  { %1643 = dma.done.wait [#allocation3], 16  }
 0x76b   :  { %1644 = vsyncadd [#allocation3], 4294967280 }
 0x76c   :  { %1369 = vsyncpa [#allocation3], 1 }

</bundles_post_ra>
